<compile_context>
chip_gen: v6e
topology: v6e:2x2x1
jax: 0.10.0
libtpu: 0.0.40
codegen_flags: <defaults>
</compile_context>

<pallas_src>
import functools

import jax
import jax.numpy as jnp
from jax.experimental import pallas as pl
from jax.experimental.pallas import tpu as pltpu


# ----------------------------- config -------------------------------------
B = 8            # batch per crop
C, H, W = 3, 16, 16
D_IN = C * H * W            # 768
HIDDEN = 256
OUT_DIM = 128               # args.out_dim
LOCAL_CROPS = 2
NCROPS = LOCAL_CROPS + 2    # 4  (student sees all, teacher sees first 2)
STUDENT_TEMP = 0.1
TEACHER_TEMP = 0.04         # teacher_temp_schedule[0] (warmup_teacher_temp)
CENTER_MOMENTUM = 0.9


# ------------------- fused Pallas kernel: heads + DINO loss -----------------
def _dino_fused_kernel(x_ref, sw1_ref, sb1_ref, sw2_ref, sb2_ref,
                       tw1_ref, tb1_ref, tw2_ref, tb2_ref, c_ref,
                       loss_ref, newc_ref,
                       *, batch, ncrops, student_temp, teacher_temp,
                       center_momentum):
    bf16 = jnp.bfloat16
    f32 = jnp.float32

    x = x_ref[...]                          # (ncrops*batch, D_IN), f32

    def head(xv, w1_ref, b1_ref, w2_ref, b2_ref):
        # bf16 operands -> native MXU input, f32 accumulation; f32 VPU math.
        h = jnp.dot(xv.astype(bf16), w1_ref[...].astype(bf16),
                    preferred_element_type=f32) + b1_ref[...]
        h = jax.nn.gelu(h, approximate=True)
        return jnp.dot(h.astype(bf16), w2_ref[...].astype(bf16),
                       preferred_element_type=f32) + b2_ref[...]

    # Teacher sees only the first 2 (global) crops; student sees all crops.
    t_out = head(x[:2 * batch, :], tw1_ref, tb1_ref, tw2_ref, tb2_ref)  # (2B, OUT)
    s_out = head(x, sw1_ref, sb1_ref, sw2_ref, sb2_ref)                 # (NB, OUT)

    c = c_ref[...]                          # (1, OUT_DIM)

    # teacher: softmax((t - center) / teacher_temp, dim=-1)
    tl = (t_out - c) * f32(1.0 / teacher_temp)
    tl = tl - jnp.max(tl, axis=-1, keepdims=True)
    te = jnp.exp(tl)
    q_all = te * pl.reciprocal(jnp.sum(te, axis=-1, keepdims=True), approx=True)

    # student: log_softmax(s / student_temp, dim=-1)
    sl = s_out * f32(1.0 / student_temp)
    sl = sl - jnp.max(sl, axis=-1, keepdims=True)
    logp_all = sl - jnp.log(jnp.sum(jnp.exp(sl), axis=-1, keepdims=True))

    # Pairwise CE over crops with the v == iq diagonal excluded, folded into a
    # single elementwise product + reduction per teacher crop:
    #   sum_{iq} sum_{v != iq} -q_iq . logp_v
    #     == sum_{iq} q_iq . (logp_iq - sum_v logp_v)
    logp_sum = logp_all[0:batch, :]
    for v in range(1, ncrops):
        logp_sum = logp_sum + logp_all[v * batch:(v + 1) * batch, :]
    total = f32(0.0)
    for iq in range(2):
        blk = slice(iq * batch, (iq + 1) * batch)
        total = total + jnp.sum(q_all[blk, :] * (logp_all[blk, :] - logp_sum))
    n_terms = 2 * (ncrops - 1)
    loss_ref[0, 0] = total * f32(1.0 / (batch * n_terms))

    # update_center (single device): EMA of the teacher batch mean (in-place
    # via input_output_aliases on the center buffer).
    batch_center = jnp.sum(t_out, axis=0, keepdims=True) * f32(1.0 / (2 * batch))
    newc_ref[...] = c * center_momentum + batch_center * (1.0 - center_momentum)


def dino_fused_loss(x_all, student_params, teacher_params, center):
    n_s = x_all.shape[0]
    n_t = 2 * B
    kernel = functools.partial(
        _dino_fused_kernel, batch=B, ncrops=NCROPS,
        student_temp=STUDENT_TEMP, teacher_temp=TEACHER_TEMP,
        center_momentum=CENTER_MOMENTUM)

    # Advisory cost hint for the XLA scheduler.
    flops = 2 * (n_s + n_t) * (D_IN * HIDDEN + HIDDEN * OUT_DIM)
    transcendentals = (n_s + n_t) * (HIDDEN + OUT_DIM)
    param_elems = 2 * (D_IN * HIDDEN + HIDDEN + HIDDEN * OUT_DIM + OUT_DIM)
    bytes_accessed = 4 * (n_s * D_IN + param_elems + 2 * OUT_DIM + 1)

    vmem = pltpu.MemorySpace.VMEM
    smem = pltpu.MemorySpace.SMEM
    loss, new_center = pl.pallas_call(
        kernel,
        out_shape=(jax.ShapeDtypeStruct((1, 1), jnp.float32),
                   jax.ShapeDtypeStruct((1, OUT_DIM), jnp.float32)),
        in_specs=[pl.BlockSpec(memory_space=vmem)] * 10,
        out_specs=(pl.BlockSpec(memory_space=smem),
                   pl.BlockSpec(memory_space=vmem)),
        input_output_aliases={9: 1},            # center buffer -> new_center
        cost_estimate=pl.CostEstimate(
            flops=flops, transcendentals=transcendentals,
            bytes_accessed=bytes_accessed),
    )(x_all,
      student_params["w1"], student_params["b1"],
      student_params["w2"], student_params["b2"],
      teacher_params["w1"], teacher_params["b1"],
      teacher_params["w2"], teacher_params["b2"],
      center)
    return loss[0, 0], new_center


# --------------------------- DINO forward_train ------------------------------
def dino_forward_train(img_list, student_params, teacher_params, center):
    # MultiCropWrapper: flatten each crop (NCHW) and stack along batch.  Only
    # the full student input is materialized; the teacher branch slices the
    # first 2*B rows inside the fused kernel (no duplicated teacher input).
    x_all = jnp.concatenate([im.reshape(im.shape[0], -1) for im in img_list],
                            axis=0)                    # (NCROPS*B, D_IN)
    loss, new_center = dino_fused_loss(x_all, student_params, teacher_params,
                                       center)
    return {"loss": loss}, new_center


# ------------------------------ reference ------------------------------------
def _ref_forward(img_list, sp, tp, center):
    def flat(crops):
        return jnp.concatenate([c.reshape(c.shape[0], -1) for c in crops], axis=0)

    def head(x, p):
        h = jnp.dot(x.astype(jnp.bfloat16), p["w1"].astype(jnp.bfloat16),
                    preferred_element_type=jnp.float32) + p["b1"]
        h = jax.nn.gelu(h, approximate=True)
        return jnp.dot(h.astype(jnp.bfloat16), p["w2"].astype(jnp.bfloat16),
                       preferred_element_type=jnp.float32) + p["b2"]

    t_out = head(flat(img_list[:2]), tp)
    s_out = head(flat(img_list), sp)
    q_all = jax.nn.softmax((t_out - center) / TEACHER_TEMP, axis=-1)
    logp_all = jax.nn.log_softmax(s_out / STUDENT_TEMP, axis=-1)
    total, n_terms = 0.0, 0
    for iq in range(2):
        q = q_all[iq * B:(iq + 1) * B]
        for v in range(NCROPS):
            if v == iq:
                continue
            lp = logp_all[v * B:(v + 1) * B]
            total += jnp.mean(jnp.sum(-q * lp, axis=-1))
            n_terms += 1
    loss = total / n_terms
    new_center = center * CENTER_MOMENTUM + (
        jnp.sum(t_out, axis=0, keepdims=True) / t_out.shape[0]) * (1 - CENTER_MOMENTUM)
    return loss, new_center


# --------------------------------- main ---------------------------------------
def _init_params(key, scale=0.02):
    k1, k2 = jax.random.split(key)
    return {
        "w1": jax.random.normal(k1, (D_IN, HIDDEN), jnp.float32) * scale,
        "b1": jnp.zeros((1, HIDDEN), jnp.float32),
        "w2": jax.random.normal(k2, (HIDDEN, OUT_DIM), jnp.float32) * scale,
        "b2": jnp.zeros((1, OUT_DIM), jnp.float32),
    }


if __name__ == "__main__":
    key = jax.random.PRNGKey(0)
    k_img, k_s, k_t = jax.random.split(key, 3)

    # ncrops images, each (B, C, H, W) in NCHW
    crop_keys = jax.random.split(k_img, NCROPS)
    img_list = [jax.random.normal(k, (B, C, H, W), jnp.float32) for k in crop_keys]

    student_params = _init_params(k_s)
    teacher_params = _init_params(k_t)
    center = jnp.zeros((1, OUT_DIM), jnp.float32)   # DINOLoss center buffer

    # Pure-JAX reference (same bf16-operand matmuls, exact softmax).
    ref_loss, ref_center = _ref_forward(img_list, student_params, teacher_params,
                                        center)

    out, new_center = dino_forward_train(img_list, student_params, teacher_params,
                                         center)
    loss = jax.block_until_ready(out["loss"])
    new_center = jax.block_until_ready(new_center)

    assert jnp.allclose(loss, ref_loss, rtol=5e-3, atol=5e-3), (loss, ref_loss)
    assert jnp.allclose(new_center, ref_center, rtol=1e-3, atol=1e-3)

    print("KERNEL_OK")
</pallas_src>

<mosaic_0001>
module attributes {stable_mosaic.version = 11 : i64} {
  func.func @_dino_fused_kernel(%arg0: memref<32x768xf32, #tpu.memory_space<vmem>>, %arg1: memref<768x256xf32, #tpu.memory_space<vmem>>, %arg2: memref<1x256xf32, #tpu.memory_space<vmem>>, %arg3: memref<256x128xf32, #tpu.memory_space<vmem>>, %arg4: memref<1x128xf32, #tpu.memory_space<vmem>>, %arg5: memref<768x256xf32, #tpu.memory_space<vmem>>, %arg6: memref<1x256xf32, #tpu.memory_space<vmem>>, %arg7: memref<256x128xf32, #tpu.memory_space<vmem>>, %arg8: memref<1x128xf32, #tpu.memory_space<vmem>>, %arg9: memref<1x128xf32, #tpu.memory_space<vmem>>, %arg10: memref<1x1xf32, #tpu.memory_space<smem>>, %arg11: memref<1x128xf32, #tpu.memory_space<vmem>>) attributes {dimension_semantics = [], scalar_prefetch = 0 : i64, scratch_operands = 0 : i64, tpu.core_type = #tpu.core_type<tc>} {
    %c0 = arith.constant 0 : index
    %c0_0 = arith.constant 0 : index
    %0 = vector.load %arg0[%c0, %c0_0] : memref<32x768xf32, #tpu.memory_space<vmem>>, vector<32x768xf32>
    %1 = vector.extract_strided_slice %0 {offsets = [0, 0], sizes = [16, 768], strides = [1, 1]} : vector<32x768xf32> to vector<16x768xf32>
    %2 = arith.truncf %1 : vector<16x768xf32> to vector<16x768xbf16>
    %c0_1 = arith.constant 0 : index
    %c0_2 = arith.constant 0 : index
    %3 = vector.load %arg5[%c0_1, %c0_2] : memref<768x256xf32, #tpu.memory_space<vmem>>, vector<768x256xf32>
    %4 = arith.truncf %3 : vector<768x256xf32> to vector<768x256xbf16>
    %cst = arith.constant dense<0.000000e+00> : vector<16x256xf32>
    %5 = tpu.matmul %2, %4, %cst {dimension_numbers = #tpu.dot_dimension_numbers<[1], [0], [0], [1], [0, 0, 1, 1], [], []>} : vector<16x768xbf16>, vector<768x256xbf16>, vector<16x256xf32> -> vector<16x256xf32>
    %c0_3 = arith.constant 0 : index
    %c0_4 = arith.constant 0 : index
    %6 = vector.load %arg6[%c0_3, %c0_4] : memref<1x256xf32, #tpu.memory_space<vmem>>, vector<1x256xf32>
    %7 = vector.broadcast %6 : vector<1x256xf32> to vector<16x256xf32>
    %8 = arith.addf %5, %7 : vector<16x256xf32>
    %9 = arith.mulf %8, %8 : vector<16x256xf32>
    %10 = arith.mulf %8, %9 : vector<16x256xf32>
    %cst_5 = arith.constant 4.471500e-02 : f32
    %11 = vector.broadcast %cst_5 : f32 to vector<16x256xf32>
    %12 = arith.mulf %11, %10 : vector<16x256xf32>
    %13 = arith.addf %8, %12 : vector<16x256xf32>
    %cst_6 = arith.constant 0.797884583 : f32
    %14 = vector.broadcast %cst_6 : f32 to vector<16x256xf32>
    %15 = arith.mulf %14, %13 : vector<16x256xf32>
    %16 = math.tanh %15 : vector<16x256xf32>
    %cst_7 = arith.constant 1.000000e+00 : f32
    %17 = vector.broadcast %cst_7 : f32 to vector<16x256xf32>
    %18 = arith.addf %17, %16 : vector<16x256xf32>
    %cst_8 = arith.constant 5.000000e-01 : f32
    %19 = vector.broadcast %cst_8 : f32 to vector<16x256xf32>
    %20 = arith.mulf %19, %18 : vector<16x256xf32>
    %21 = arith.mulf %8, %20 : vector<16x256xf32>
    %22 = arith.truncf %21 : vector<16x256xf32> to vector<16x256xbf16>
    %c0_9 = arith.constant 0 : index
    %c0_10 = arith.constant 0 : index
    %23 = vector.load %arg7[%c0_9, %c0_10] : memref<256x128xf32, #tpu.memory_space<vmem>>, vector<256x128xf32>
    %24 = arith.truncf %23 : vector<256x128xf32> to vector<256x128xbf16>
    %cst_11 = arith.constant dense<0.000000e+00> : vector<16x128xf32>
    %25 = tpu.matmul %22, %24, %cst_11 {dimension_numbers = #tpu.dot_dimension_numbers<[1], [0], [0], [1], [0, 0, 1, 1], [], []>} : vector<16x256xbf16>, vector<256x128xbf16>, vector<16x128xf32> -> vector<16x128xf32>
    %c0_12 = arith.constant 0 : index
    %c0_13 = arith.constant 0 : index
    %26 = vector.load %arg8[%c0_12, %c0_13] : memref<1x128xf32, #tpu.memory_space<vmem>>, vector<1x128xf32>
    %27 = vector.broadcast %26 : vector<1x128xf32> to vector<16x128xf32>
    %28 = arith.addf %25, %27 : vector<16x128xf32>
    %29 = arith.truncf %0 : vector<32x768xf32> to vector<32x768xbf16>
    %c0_14 = arith.constant 0 : index
    %c0_15 = arith.constant 0 : index
    %30 = vector.load %arg1[%c0_14, %c0_15] : memref<768x256xf32, #tpu.memory_space<vmem>>, vector<768x256xf32>
    %31 = arith.truncf %30 : vector<768x256xf32> to vector<768x256xbf16>
    %cst_16 = arith.constant dense<0.000000e+00> : vector<32x256xf32>
    %32 = tpu.matmul %29, %31, %cst_16 {dimension_numbers = #tpu.dot_dimension_numbers<[1], [0], [0], [1], [0, 0, 1, 1], [], []>} : vector<32x768xbf16>, vector<768x256xbf16>, vector<32x256xf32> -> vector<32x256xf32>
    %c0_17 = arith.constant 0 : index
    %c0_18 = arith.constant 0 : index
    %33 = vector.load %arg2[%c0_17, %c0_18] : memref<1x256xf32, #tpu.memory_space<vmem>>, vector<1x256xf32>
    %34 = vector.broadcast %33 : vector<1x256xf32> to vector<32x256xf32>
    %35 = arith.addf %32, %34 : vector<32x256xf32>
    %36 = arith.mulf %35, %35 : vector<32x256xf32>
    %37 = arith.mulf %35, %36 : vector<32x256xf32>
    %cst_19 = arith.constant 4.471500e-02 : f32
    %38 = vector.broadcast %cst_19 : f32 to vector<32x256xf32>
    %39 = arith.mulf %38, %37 : vector<32x256xf32>
    %40 = arith.addf %35, %39 : vector<32x256xf32>
    %cst_20 = arith.constant 0.797884583 : f32
    %41 = vector.broadcast %cst_20 : f32 to vector<32x256xf32>
    %42 = arith.mulf %41, %40 : vector<32x256xf32>
    %43 = math.tanh %42 : vector<32x256xf32>
    %cst_21 = arith.constant 1.000000e+00 : f32
    %44 = vector.broadcast %cst_21 : f32 to vector<32x256xf32>
    %45 = arith.addf %44, %43 : vector<32x256xf32>
    %cst_22 = arith.constant 5.000000e-01 : f32
    %46 = vector.broadcast %cst_22 : f32 to vector<32x256xf32>
    %47 = arith.mulf %46, %45 : vector<32x256xf32>
    %48 = arith.mulf %35, %47 : vector<32x256xf32>
    %49 = arith.truncf %48 : vector<32x256xf32> to vector<32x256xbf16>
    %c0_23 = arith.constant 0 : index
    %c0_24 = arith.constant 0 : index
    %50 = vector.load %arg3[%c0_23, %c0_24] : memref<256x128xf32, #tpu.memory_space<vmem>>, vector<256x128xf32>
    %51 = arith.truncf %50 : vector<256x128xf32> to vector<256x128xbf16>
    %cst_25 = arith.constant dense<0.000000e+00> : vector<32x128xf32>
    %52 = tpu.matmul %49, %51, %cst_25 {dimension_numbers = #tpu.dot_dimension_numbers<[1], [0], [0], [1], [0, 0, 1, 1], [], []>} : vector<32x256xbf16>, vector<256x128xbf16>, vector<32x128xf32> -> vector<32x128xf32>
    %c0_26 = arith.constant 0 : index
    %c0_27 = arith.constant 0 : index
    %53 = vector.load %arg4[%c0_26, %c0_27] : memref<1x128xf32, #tpu.memory_space<vmem>>, vector<1x128xf32>
    %54 = vector.broadcast %53 : vector<1x128xf32> to vector<32x128xf32>
    %55 = arith.addf %52, %54 : vector<32x128xf32>
    %c0_28 = arith.constant 0 : index
    %c0_29 = arith.constant 0 : index
    %56 = vector.load %arg9[%c0_28, %c0_29] : memref<1x128xf32, #tpu.memory_space<vmem>>, vector<1x128xf32>
    %57 = vector.broadcast %56 : vector<1x128xf32> to vector<16x128xf32>
    %58 = arith.subf %28, %57 : vector<16x128xf32>
    %cst_30 = arith.constant 2.500000e+01 : f32
    %59 = vector.broadcast %cst_30 : f32 to vector<16x128xf32>
    %60 = arith.mulf %58, %59 : vector<16x128xf32>
    %cst_31 = arith.constant dense<0xFF800000> : vector<16xf32>
    %61 = vector.multi_reduction <maximumf>, %60, %cst_31 [1] : vector<16x128xf32> to vector<16xf32>
    %62 = vector.shape_cast %61 : vector<16xf32> to vector<16x1xf32>
    %63 = vector.broadcast %62 : vector<16x1xf32> to vector<16x128xf32>
    %64 = arith.subf %60, %63 : vector<16x128xf32>
    %65 = math.exp %64 : vector<16x128xf32>
    %cst_32 = arith.constant dense<0.000000e+00> : vector<16xf32>
    %66 = vector.multi_reduction <add>, %65, %cst_32 [1] : vector<16x128xf32> to vector<16xf32>
    %67 = vector.shape_cast %66 : vector<16xf32> to vector<16x1xf32>
    %68 = tpu.reciprocal %67 {approx = true} : vector<16x1xf32> -> vector<16x1xf32>
    %69 = vector.broadcast %68 : vector<16x1xf32> to vector<16x128xf32>
    %70 = arith.mulf %65, %69 : vector<16x128xf32>
    %cst_33 = arith.constant 1.000000e+01 : f32
    %71 = vector.broadcast %cst_33 : f32 to vector<32x128xf32>
    %72 = arith.mulf %55, %71 : vector<32x128xf32>
    %cst_34 = arith.constant dense<0xFF800000> : vector<32xf32>
    %73 = vector.multi_reduction <maximumf>, %72, %cst_34 [1] : vector<32x128xf32> to vector<32xf32>
    %74 = vector.shape_cast %73 : vector<32xf32> to vector<32x1xf32>
    %75 = vector.broadcast %74 : vector<32x1xf32> to vector<32x128xf32>
    %76 = arith.subf %72, %75 : vector<32x128xf32>
    %77 = math.exp %76 : vector<32x128xf32>
    %cst_35 = arith.constant dense<0.000000e+00> : vector<32xf32>
    %78 = vector.multi_reduction <add>, %77, %cst_35 [1] : vector<32x128xf32> to vector<32xf32>
    %79 = vector.shape_cast %78 : vector<32xf32> to vector<32x1xf32>
    %80 = math.log %79 : vector<32x1xf32>
    %81 = vector.broadcast %80 : vector<32x1xf32> to vector<32x128xf32>
    %82 = arith.subf %76, %81 : vector<32x128xf32>
    %83 = vector.extract_strided_slice %82 {offsets = [0, 0], sizes = [8, 128], strides = [1, 1]} : vector<32x128xf32> to vector<8x128xf32>
    %84 = vector.extract_strided_slice %82 {offsets = [8, 0], sizes = [8, 128], strides = [1, 1]} : vector<32x128xf32> to vector<8x128xf32>
    %85 = arith.addf %83, %84 : vector<8x128xf32>
    %86 = vector.extract_strided_slice %82 {offsets = [16, 0], sizes = [8, 128], strides = [1, 1]} : vector<32x128xf32> to vector<8x128xf32>
    %87 = arith.addf %85, %86 : vector<8x128xf32>
    %88 = vector.extract_strided_slice %82 {offsets = [24, 0], sizes = [8, 128], strides = [1, 1]} : vector<32x128xf32> to vector<8x128xf32>
    %89 = arith.addf %87, %88 : vector<8x128xf32>
    %90 = vector.extract_strided_slice %70 {offsets = [0, 0], sizes = [8, 128], strides = [1, 1]} : vector<16x128xf32> to vector<8x128xf32>
    %91 = vector.extract_strided_slice %82 {offsets = [0, 0], sizes = [8, 128], strides = [1, 1]} : vector<32x128xf32> to vector<8x128xf32>
    %92 = arith.subf %91, %89 : vector<8x128xf32>
    %93 = arith.mulf %90, %92 : vector<8x128xf32>
    %94 = vector.shape_cast %93 : vector<8x128xf32> to vector<1x8x128xf32>
    %cst_36 = arith.constant dense<0.000000e+00> : vector<1xf32>
    %95 = vector.multi_reduction <add>, %94, %cst_36 [1, 2] : vector<1x8x128xf32> to vector<1xf32>
    %96 = vector.shape_cast %95 : vector<1xf32> to vector<1x1x1xf32>
    %97 = vector.extract %96[0, 0, 0] : f32 from vector<1x1x1xf32>
    %cst_37 = arith.constant 0.000000e+00 : f32
    %98 = arith.addf %cst_37, %97 : f32
    %99 = vector.extract_strided_slice %70 {offsets = [8, 0], sizes = [8, 128], strides = [1, 1]} : vector<16x128xf32> to vector<8x128xf32>
    %100 = vector.extract_strided_slice %82 {offsets = [8, 0], sizes = [8, 128], strides = [1, 1]} : vector<32x128xf32> to vector<8x128xf32>
    %101 = arith.subf %100, %89 : vector<8x128xf32>
    %102 = arith.mulf %99, %101 : vector<8x128xf32>
    %103 = vector.shape_cast %102 : vector<8x128xf32> to vector<1x8x128xf32>
    %cst_38 = arith.constant dense<0.000000e+00> : vector<1xf32>
    %104 = vector.multi_reduction <add>, %103, %cst_38 [1, 2] : vector<1x8x128xf32> to vector<1xf32>
    %105 = vector.shape_cast %104 : vector<1xf32> to vector<1x1x1xf32>
    %106 = vector.extract %105[0, 0, 0] : f32 from vector<1x1x1xf32>
    %107 = arith.addf %98, %106 : f32
    %cst_39 = arith.constant 0.020833334 : f32
    %108 = arith.mulf %107, %cst_39 : f32
    %c0_40 = arith.constant 0 : index
    %c0_41 = arith.constant 0 : index
    %109 = memref.load %arg10[%c0_40, %c0_41] : memref<1x1xf32, #tpu.memory_space<smem>>
    memref.store %108, %arg10[%c0_40, %c0_41] : memref<1x1xf32, #tpu.memory_space<smem>>
    %cst_42 = arith.constant dense<0.000000e+00> : vector<128xf32>
    %110 = vector.multi_reduction <add>, %28, %cst_42 [0] : vector<16x128xf32> to vector<128xf32>
    %111 = vector.shape_cast %110 : vector<128xf32> to vector<1x128xf32>
    %cst_43 = arith.constant 6.250000e-02 : f32
    %112 = vector.broadcast %cst_43 : f32 to vector<1x128xf32>
    %113 = arith.mulf %111, %112 : vector<1x128xf32>
    %cst_44 = arith.constant 0.899999976 : f32
    %114 = vector.broadcast %cst_44 : f32 to vector<1x128xf32>
    %115 = arith.mulf %56, %114 : vector<1x128xf32>
    %cst_45 = arith.constant 1.000000e-01 : f32
    %116 = vector.broadcast %cst_45 : f32 to vector<1x128xf32>
    %117 = arith.mulf %113, %116 : vector<1x128xf32>
    %118 = arith.addf %115, %117 : vector<1x128xf32>
    %c0_46 = arith.constant 0 : index
    %c0_47 = arith.constant 0 : index
    %119 = vector.load %arg11[%c0_46, %c0_47] : memref<1x128xf32, #tpu.memory_space<vmem>>, vector<1x128xf32>
    tpu.vector_store %arg11[%c0_46, %c0_47], %118 {strides = array<i32>} : memref<1x128xf32, #tpu.memory_space<vmem>>, vector<1x128xf32>,
    return
  }
}

</mosaic_0001>

<bundles_post_ra>
// kernel: tpu_custom_call.1
= control target key start
LH: loop header
LB: loop body
LE: loop exit
PB: predicated region body
PF: predicated region fallthrough
CT: control target
= control target key end

     0   :  { %17 = vsyncpa [#allocation3], 0  ;;  %s2022_s0 = inlined_call_operand.hbm [shape: f32[32,768], index: 0, kind: input, shape index: {}]   ;;  %s2023_s1 = inlined_call_operand.hbm [shape: f32[768,256], index: 1, kind: input, shape index: {}]   ;;  %s2024_s2 = inlined_call_operand.vmem [shape: f32[1,256], index: 2, kind: input, shape index: {}]   ;;  %s2025_s3 = inlined_call_operand.hbm [shape: f32[256,128], index: 3, kind: input, shape index: {}]   ;;  %s2026_s4 = inlined_call_operand.vmem [shape: f32[1,128], index: 4, kind: input, shape index: {}]   ;;  %s2027_s5 = inlined_call_operand.hbm [shape: f32[768,256], index: 5, kind: input, shape index: {}]   ;;  %s2028_s6 = inlined_call_operand.vmem [shape: f32[1,256], index: 6, kind: input, shape index: {}]   ;;  %s2029_s7 = inlined_call_operand.hbm [shape: f32[256,128], index: 7, kind: input, shape index: {}]   ;;  %s2030_s8 = inlined_call_operand.hbm [shape: f32[1,128], index: 8, kind: input, shape index: {}]   ;;  %s2031_s9 = inlined_call_operand.hbm [shape: f32[1,128], index: 9, kind: input, shape index: {}, may-alias: {9,11}]   ;;  %s2032_s10 = inlined_call_operand.hbm [shape: f32[1,1], index: 10, kind: output, shape index: {0}]   ;;  %s2033_s11 = inlined_call_operand.hbm [shape: f32[1,128], index: 11, kind: output, shape index: {1}, may-alias: {9,11}]  }
   0x1   :  { %18 = vsyncpa [#allocation7], 0 }
   0x2   :  { %19 = vsyncpa [#allocation10], 0 }
   0x3   :  { %20 = vsyncpa [#allocation13], 0 }
   0x4   :  { %21 = vsyncpa [#allocation5], 0 }
   0x5   :  { %22 = vsyncpa [#allocation4], 0  ;;  %s1814_s17 = smov [#allocation6]  }
   0x6   :  { %s40_s18 = sshll.u32 %s1814_s17, 4  ;;  %s41_s18 = int_to_ptr.vmem [resolvable:$true] %s40_s18 }
   0x7   :  { %s1642_s19 = scalar_lea.vmem %s41_s18, 24576  ;;  %p1647_p1 = scmp.lt.s32.totalorder %s41_s18, %s41_s18 }
   0x8   :  { %p1643_p0 = scmp.ne.s32.totalorder %s41_s18, %s1642_s19  ;;  %p1648_p2 = scmp.lt.s32.totalorder %s1642_s19, %s1642_s19 }
   0xa   :  { %p1649_p3 = por %p1648_p2, %p1647_p1 }
   0xc   :  { %p1650_p4 = pnand %p1649_p3, %p1643_p0 }
   0xe   :  { %1653 = shalt.err (!%p1650_p4)
}
   0xf   :  { %s1815_s20 = smov 256   ;;  %s1816_s21 = smov 16  }
  0x10   :  { %46 = dma.hbm_to_vmem [thread:$0]  %s2023_s1, 24576, %s41_s18, [#allocation7], %s1815_s20, %s1815_s20, %s1816_s21  }
  0x11   :  { %s1817_s24 = smov [#allocation9]   ;;  %s1818_s26 = smov [#allocation12]  }
  0x12   :  { %s68_s25 = sshll.u32 %s1817_s24, 4  ;;  %s95_s27 = sshll.u32 %s1818_s26, 4  ;;  %s69_s25 = int_to_ptr.vmem [resolvable:$true] %s68_s25  ;;  %s96_s27 = int_to_ptr.vmem [resolvable:$true] %s95_s27 }
  0x13   :  { %s1662_s28 = scalar_lea.vmem %s69_s25, 24576  ;;  %p1667_p6 = scmp.lt.s32.totalorder %s69_s25, %s69_s25 }
  0x14   :  { %p1663_p5 = scmp.ne.s32.totalorder %s69_s25, %s1662_s28  ;;  %p1668_p7 = scmp.lt.s32.totalorder %s1662_s28, %s1662_s28 }
  0x16   :  { %p1669_p8 = por %p1668_p7, %p1667_p6 }
  0x18   :  { %p1670_p9 = pnand %p1669_p8, %p1663_p5 }
  0x1a   :  { %1673 = shalt.err (!%p1670_p9)
}
  0x1b   :  { %74 = dma.hbm_to_vmem [thread:$0]  %s2027_s5, 24576, %s69_s25, [#allocation10], %s1815_s20, %s1815_s20, %s1816_s21  }
  0x1c   :  { %s1682_s12 = scalar_lea.vmem %s96_s27, 16  ;;  %s1686_s1 = scalar_lea.vmem %s96_s27, 32 }
  0x1d   :  { %p1683_p10 = scmp.ne.s32.totalorder %s96_s27, %s1682_s12  ;;  %p1687_p11 = scmp.lt.s32.totalorder %s96_s27, %s96_s27 }
  0x1e   :  { %p1688_p12 = scmp.lt.s32.totalorder %s1686_s1, %s1682_s12 }
  0x20   :  { %p1689_p13 = por %p1688_p12, %p1687_p11 }
  0x22   :  { %p1690_p0 = pnand %p1689_p13, %p1683_p10 }
  0x24   :  { %1693 = shalt.err (!%p1690_p0)
}
  0x25   :  { %98 = dma.hbm_to_vmem [thread:$0]  %s2030_s8, 16, %s96_s27, [#allocation13]  }
  0x26   :  { %s1819_s15 = smov [#allocation2]  }
  0x27   :  { %s28_s16 = sshll.u32 %s1819_s15, 4  ;;  %s29_s16 = int_to_ptr.vmem [resolvable:$true] %s28_s16 }
  0x28   :  { %s1702_s17 = scalar_lea.vmem %s29_s16, 3072  ;;  %p1707_p2 = scmp.lt.s32.totalorder %s29_s16, %s29_s16 }
  0x29   :  { %p1703_p1 = scmp.ne.s32.totalorder %s29_s16, %s1702_s17  ;;  %p1708_p3 = scmp.lt.s32.totalorder %s1702_s17, %s1702_s17 }
  0x2b   :  { %p1709_p4 = por %p1708_p3, %p1707_p2 }
  0x2d   :  { %p1710_p5 = pnand %p1709_p4, %p1703_p1 }
  0x2f   :  { %1713 = shalt.err (!%p1710_p5)
}
  0x30   :  { %s1820_s5 = smov 768   ;;  %s1821_s18 = smov 48  }
  0x31   :  { %34 = dma.hbm_to_vmem [thread:$0]  %s2022_s0, 3072, %s29_s16, [#allocation3], %s1820_s5, %s1820_s5, %s1821_s18  }
  0x32   :  { %s1822_s21 = smov [#allocation8]  }
  0x33   :  { %s54_s22 = sshll.u32 %s1822_s21, 4  ;;  %s55_s22 = int_to_ptr.vmem [resolvable:$true] %s54_s22 }
  0x34   :  { %s1722_s8 = scalar_lea.vmem %s55_s22, 4096  ;;  %p1727_p7 = scmp.lt.s32.totalorder %s55_s22, %s55_s22 }
  0x35   :  { %p1723_p6 = scmp.ne.s32.totalorder %s55_s22, %s1722_s8  ;;  %p1728_p8 = scmp.lt.s32.totalorder %s1722_s8, %s1722_s8 }
  0x37   :  { %p1729_p9 = por %p1728_p8, %p1727_p7 }
  0x39   :  { %p1730_p10 = pnand %p1729_p9, %p1723_p6 }
  0x3b   :  { %1733 = shalt.err (!%p1730_p10)
}
  0x3c   :  { %s1823_s23 = smov 128   ;;  %s1824_s24 = smov 8  }
  0x3d   :  { %60 = dma.hbm_to_vmem [thread:$0]  %s2025_s3, 4096, %s55_s22, [#allocation7], %s1823_s23, %s1823_s23, %s1824_s24  }
  0x3e   :  { %s1825_s27 = smov [#allocation11]   ;;  %s1826_s0 = smov [#allocation14]  }
  0x3f   :  { %s82_s28 = sshll.u32 %s1825_s27, 4  ;;  %s105_s29 = sshll.u32 %s1826_s0, 4  ;;  %s83_s28 = int_to_ptr.vmem [resolvable:$true] %s82_s28  ;;  %s106_s29 = int_to_ptr.vmem [resolvable:$true] %s105_s29 }
  0x40   :  { %s1742_s30 = scalar_lea.vmem %s83_s28, 4096  ;;  %p1747_p12 = scmp.lt.s32.totalorder %s83_s28, %s83_s28 }
  0x41   :  { %p1743_p11 = scmp.ne.s32.totalorder %s83_s28, %s1742_s30  ;;  %p1748_p13 = scmp.lt.s32.totalorder %s1742_s30, %s1742_s30 }
  0x43   :  { %p1749_p0 = por %p1748_p13, %p1747_p12 }
  0x45   :  { %p1750_p1 = pnand %p1749_p0, %p1743_p11 }
  0x47   :  { %1753 = shalt.err (!%p1750_p1)
}
  0x48   :  { %88 = dma.hbm_to_vmem [thread:$0]  %s2029_s7, 4096, %s83_s28, [#allocation10], %s1823_s23, %s1823_s23, %s1824_s24  }
  0x49   :  { %s1762_s13 = scalar_lea.vmem %s106_s29, 16  ;;  %s1766_s3 = scalar_lea.vmem %s106_s29, 32 }
  0x4a   :  { %p1763_p2 = scmp.ne.s32.totalorder %s106_s29, %s1762_s13  ;;  %p1767_p3 = scmp.lt.s32.totalorder %s106_s29, %s106_s29 }
  0x4b   :  { %p1768_p4 = scmp.lt.s32.totalorder %s1766_s3, %s1762_s13 }
  0x4d   :  { %p1769_p5 = por %p1768_p4, %p1767_p3 }
  0x4f   :  { %p1770_p6 = pnand %p1769_p5, %p1763_p2 }
  0x51   :  { %1773 = shalt.err (!%p1770_p6)
}
  0x52   :  { %108 = dma.hbm_to_vmem [thread:$0]  %s2031_s9, 16, %s106_s29, [#allocation13]  }
  0x53   :  { %1802 = dma.done.wait [#allocation3], 3072  }
  0x54   :  { %1803 = vsyncadd [#allocation3], 4294964224 }
  0x55   :  { %1804 = dma.done.wait [#allocation7], 28672  }
  0x56   :  { %1805 = vsyncadd [#allocation7], 4294938624 }
  0x57   :  { %1806 = dma.done.wait [#allocation10], 28672  }
  0x58   :  { %1807 = vsyncadd [#allocation10], 4294938624 }
  0x59   :  { %1808 = dma.done.wait [#allocation13], 32  }
  0x5a   :  { %1809 = vsyncadd [#allocation13], 4294967264  ;;  %v190_v0 = vld [vmem:[#allocation9 + $0xe8] sm:$0xff]  ;;  %v192_v1 = vld [vmem:[#allocation9 + $0xf8] sm:$0xff] }
  0x5b   :  { %v189_v2 = vld [vmem:[#allocation9 + $0xe0] sm:$0xff]  ;;  %v368_v3 = vpack.c.bf16 %v192_v1, %v190_v0  ;;  %v191_v4 = vld [vmem:[#allocation9 + $0xf0] sm:$0xff]  ;;  %v254_v5 = vld [vmem:[#allocation9 + $0x2e8] sm:$0xff] }
  0x5c   :  { %v256_v6 = vld [vmem:[#allocation9 + $0x2f8] sm:$0xff]  ;;  %v367_v7 = vpack.c.bf16 %v191_v4, %v189_v2  ;;  %v253_v9 = vld [vmem:[#allocation9 + $0x2e0] sm:$0xff]  ;;  %v255_v10 = vld [vmem:[#allocation9 + $0x2f0] sm:$0xff] }
  0x5d   :  { %v400_v8 = vpack.c.bf16 %v256_v6, %v254_v5  ;;  %v186_v11 = vld [vmem:[#allocation9 + $0xc8] sm:$0xff]  ;;  %461 = vmatprep.subr.bf16.mxu0 %v368_v3  ;;  %v399_v12 = vpack.c.bf16 %v255_v10, %v253_v9  ;;  %v188_v13 = vld [vmem:[#allocation9 + $0xd8] sm:$0xff]  ;;  %v185_v14 = vld [vmem:[#allocation9 + $0xc0] sm:$0xff] }
  0x5e   :  { %v187_v15 = vld [vmem:[#allocation9 + $0xd0] sm:$0xff]  ;;  %462 = vmatpush1.bf16.msra.mxu0 %v367_v7  ;;  %v366_v16 = vpack.c.bf16 %v188_v13, %v186_v11  ;;  %v250_v18 = vld [vmem:[#allocation9 + $0x2c8] sm:$0xff]  ;;  %v252_v19 = vld [vmem:[#allocation9 + $0x2d8] sm:$0xff] }
  0x5f   :  { %504 = vmatprep.subr.bf16.mxu1 %v400_v8  ;;  %v365_v17 = vpack.c.bf16 %v187_v15, %v185_v14  ;;  %v249_v20 = vld [vmem:[#allocation9 + $0x2c0] sm:$0xff]  ;;  %v398_v21 = vpack.c.bf16 %v252_v19, %v250_v18  ;;  %v251_v22 = vld [vmem:[#allocation9 + $0x2d0] sm:$0xff]  ;;  %v182_v23 = vld [vmem:[#allocation9 + $0xa8] sm:$0xff] }
  0x60   :  { %505 = vmatpush1.bf16.msra.mxu1 %v399_v12  ;;  %v184_v24 = vld [vmem:[#allocation9 + $0xb8] sm:$0xff]  ;;  %463 = vmatprep.subr.bf16.mxu0 %v366_v16  ;;  %v397_v25 = vpack.c.bf16 %v251_v22, %v249_v20  ;;  %v181_v27 = vld [vmem:[#allocation9 + $0xa0] sm:$0xff]  ;;  %v183_v28 = vld [vmem:[#allocation9 + $0xb0] sm:$0xff] }
  0x61   :  { %v364_v26 = vpack.c.bf16 %v184_v24, %v182_v23  ;;  %v246_v29 = vld [vmem:[#allocation9 + $0x2a8] sm:$0xff]  ;;  %506 = vmatprep.subr.bf16.mxu1 %v398_v21  ;;  %v248_v30 = vld [vmem:[#allocation9 + $0x2b8] sm:$0xff]  ;;  %v245_v31 = vld [vmem:[#allocation9 + $0x2a0] sm:$0xff]  ;;  %v363_v33 = vpack.c.bf16 %v183_v28, %v181_v27 }
  0x62   :  { %v247_v32 = vld [vmem:[#allocation9 + $0x2b0] sm:$0xff]  ;;  %464 = vmatpush1.bf16.msra.mxu0 %v365_v17  ;;  %v396_v34 = vpack.c.bf16 %v248_v30, %v246_v29  ;;  %v178_v35 = vld [vmem:[#allocation9 + $0x88] sm:$0xff]  ;;  %v180_v36 = vld [vmem:[#allocation9 + $0x98] sm:$0xff] }
  0x63   :  { %v177_v37 = vld [vmem:[#allocation9 + $0x80] sm:$0xff]  ;;  %465 = vmatprep.subr.bf16.mxu0 %v364_v26  ;;  %v395_v38 = vpack.c.bf16 %v247_v32, %v245_v31  ;;  %v362_v39 = vpack.c.bf16 %v180_v36, %v178_v35  ;;  %v179_v40 = vld [vmem:[#allocation9 + $0x90] sm:$0xff]  ;;  %v242_v41 = vld [vmem:[#allocation9 + $0x288] sm:$0xff] }
  0x64   :  { %507 = vmatpush1.bf16.msra.mxu1 %v397_v25  ;;  %v244_v42 = vld [vmem:[#allocation9 + $0x298] sm:$0xff]  ;;  %v241_v44 = vld [vmem:[#allocation9 + $0x280] sm:$0xff]  ;;  %v243_v45 = vld [vmem:[#allocation9 + $0x290] sm:$0xff]  ;;  %v361_v48 = vpack.c.bf16 %v179_v40, %v177_v37 }
  0x65   :  { %508 = vmatprep.subr.bf16.mxu1 %v396_v34  ;;  %v394_v43 = vpack.c.bf16 %v244_v42, %v242_v41  ;;  %v174_v46 = vld [vmem:[#allocation9 + $0x68] sm:$0xff]  ;;  %v176_v47 = vld [vmem:[#allocation9 + $0x78] sm:$0xff]  ;;  %v393_v51 = vpack.c.bf16 %v243_v45, %v241_v44  ;;  %v173_v53 = vld [vmem:[#allocation9 + $0x60] sm:$0xff] }
  0x66   :  { %466 = vmatpush1.bf16.msra.mxu0 %v363_v33  ;;  %v238_v49 = vld [vmem:[#allocation9 + $0x268] sm:$0xff]  ;;  %v240_v50 = vld [vmem:[#allocation9 + $0x278] sm:$0xff]  ;;  %v360_v52 = vpack.c.bf16 %v176_v47, %v174_v46  ;;  %v175_v54 = vld [vmem:[#allocation9 + $0x70] sm:$0xff] }
  0x67   :  { %467 = vmatprep.subr.bf16.mxu0 %v362_v39  ;;  %v237_v55 = vld [vmem:[#allocation9 + $0x260] sm:$0xff]  ;;  %v392_v56 = vpack.c.bf16 %v240_v50, %v238_v49  ;;  %v239_v57 = vld [vmem:[#allocation9 + $0x270] sm:$0xff]  ;;  %v170_v58 = vld [vmem:[#allocation9 + $0x48] sm:$0xff]  ;;  %v359_v62 = vpack.c.bf16 %v175_v54, %v173_v53 }
  0x68   :  { %509 = vmatpush1.bf16.msra.mxu1 %v395_v38  ;;  %v172_v59 = vld [vmem:[#allocation9 + $0x58] sm:$0xff]  ;;  %v234_v60 = vld [vmem:[#allocation9 + $0x248] sm:$0xff]  ;;  %v391_v63 = vpack.c.bf16 %v239_v57, %v237_v55  ;;  %v169_v1 = vld [vmem:[#allocation9 + $0x40] sm:$0xff] }
  0x69   :  { %510 = vmatprep.subr.bf16.mxu1 %v394_v43  ;;  %v236_v61 = vld [vmem:[#allocation9 + $0x258] sm:$0xff]  ;;  %v358_v0 = vpack.c.bf16 %v172_v59, %v170_v58  ;;  %v171_v2 = vld [vmem:[#allocation9 + $0x50] sm:$0xff]  ;;  %v233_v3 = vld [vmem:[#allocation9 + $0x240] sm:$0xff] }
  0x6a   :  { %468 = vmatpush1.bf16.msra.mxu0 %v361_v48  ;;  %v390_v4 = vpack.c.bf16 %v236_v61, %v234_v60  ;;  %v235_v5 = vld [vmem:[#allocation9 + $0x250] sm:$0xff]  ;;  %v166_v6 = vld [vmem:[#allocation9 + $0x28] sm:$0xff]  ;;  %v168_v7 = vld [vmem:[#allocation9 + $0x38] sm:$0xff]  ;;  %v357_v10 = vpack.c.bf16 %v171_v2, %v169_v1 }
  0x6b   :  { %469 = vmatprep.subr.bf16.mxu0 %v360_v52  ;;  %v230_v8 = vld [vmem:[#allocation9 + $0x228] sm:$0xff]  ;;  %v232_v9 = vld [vmem:[#allocation9 + $0x238] sm:$0xff]  ;;  %v389_v11 = vpack.c.bf16 %v235_v5, %v233_v3  ;;  %v356_v12 = vpack.c.bf16 %v168_v7, %v166_v6  ;;  %v165_v13 = vld [vmem:[#allocation9 + $0x20] sm:$0xff] }
  0x6c   :  { %511 = vmatpush1.bf16.msra.mxu1 %v393_v51  ;;  %v167_v14 = vld [vmem:[#allocation9 + $0x30] sm:$0xff]  ;;  %v229_v15 = vld [vmem:[#allocation9 + $0x220] sm:$0xff]  ;;  %v388_v16 = vpack.c.bf16 %v232_v9, %v230_v8  ;;  %v162_v18 = vld [vmem:[#allocation9 + $0x8] sm:$0xff] }
  0x6d   :  { %512 = vmatprep.subr.bf16.mxu1 %v392_v56  ;;  %v231_v17 = vld [vmem:[#allocation9 + $0x230] sm:$0xff]  ;;  %v164_v19 = vld [vmem:[#allocation9 + $0x18] sm:$0xff]  ;;  %v226_v20 = vld [vmem:[#allocation9 + $0x208] sm:$0xff]  ;;  %v355_v22 = vpack.c.bf16 %v167_v14, %v165_v13 }
  0x6e   :  { %470 = vmatpush1.bf16.msra.mxu0 %v359_v62  ;;  %v228_v21 = vld [vmem:[#allocation9 + $0x218] sm:$0xff]  ;;  %v387_v23 = vpack.c.bf16 %v231_v17, %v229_v15  ;;  %v354_v24 = vpack.c.bf16 %v164_v19, %v162_v18  ;;  %v161_v25 = vld [vmem:[#allocation9] sm:$0xff]  ;;  %v163_v26 = vld [vmem:[#allocation9 + $0x10] sm:$0xff] }
  0x6f   :  { %471 = vmatprep.subr.bf16.mxu0 %v358_v0  ;;  %v225_v27 = vld [vmem:[#allocation9 + $0x200] sm:$0xff]  ;;  %v386_v28 = vpack.c.bf16 %v228_v21, %v226_v20  ;;  %v227_v29 = vld [vmem:[#allocation9 + $0x210] sm:$0xff]  ;;  %v222_v30 = vld [vmem:[#allocation9 + $0x1e8] sm:$0xff]  ;;  %v353_v34 = vpack.c.bf16 %v163_v26, %v161_v25 }
  0x70   :  { %513 = vmatpush1.bf16.msra.mxu1 %v391_v63  ;;  %v224_v31 = vld [vmem:[#allocation9 + $0x1f8] sm:$0xff]  ;;  %v286_v32 = vld [vmem:[#allocation9 + $0x3e8] sm:$0xff]  ;;  %v385_v35 = vpack.c.bf16 %v227_v29, %v225_v27  ;;  %v221_v37 = vld [vmem:[#allocation9 + $0x1e0] sm:$0xff] }
  0x71   :  { %514 = vmatprep.subr.bf16.mxu1 %v390_v4  ;;  %v288_v33 = vld [vmem:[#allocation9 + $0x3f8] sm:$0xff]  ;;  %v384_v36 = vpack.c.bf16 %v224_v31, %v222_v30  ;;  %v223_v38 = vld [vmem:[#allocation9 + $0x1f0] sm:$0xff]  ;;  %v285_v39 = vld [vmem:[#allocation9 + $0x3e0] sm:$0xff] }
  0x72   :  { %472 = vmatpush1.bf16.msra.mxu0 %v357_v10  ;;  %v416_v40 = vpack.c.bf16 %v288_v33, %v286_v32  ;;  %v287_v41 = vld [vmem:[#allocation9 + $0x3f0] sm:$0xff]  ;;  %v218_v42 = vld [vmem:[#allocation9 + $0x1c8] sm:$0xff]  ;;  %v220_v43 = vld [vmem:[#allocation9 + $0x1d8] sm:$0xff]  ;;  %v383_v46 = vpack.c.bf16 %v223_v38, %v221_v37 }
  0x73   :  { %473 = vmatprep.subr.bf16.mxu0 %v356_v12  ;;  %v282_v44 = vld [vmem:[#allocation9 + $0x3c8] sm:$0xff]  ;;  %v284_v45 = vld [vmem:[#allocation9 + $0x3d8] sm:$0xff]  ;;  %v415_v47 = vpack.c.bf16 %v287_v41, %v285_v39  ;;  %v382_v48 = vpack.c.bf16 %v220_v43, %v218_v42  ;;  %v217_v49 = vld [vmem:[#allocation9 + $0x1c0] sm:$0xff] }
  0x74   :  { %515 = vmatpush1.bf16.msra.mxu1 %v389_v11  ;;  %v219_v50 = vld [vmem:[#allocation9 + $0x1d0] sm:$0xff]  ;;  %v281_v51 = vld [vmem:[#allocation9 + $0x3c0] sm:$0xff]  ;;  %v414_v52 = vpack.c.bf16 %v284_v45, %v282_v44  ;;  %v214_v54 = vld [vmem:[#allocation9 + $0x1a8] sm:$0xff] }
  0x75   :  { %516 = vmatprep.subr.bf16.mxu1 %v388_v16  ;;  %v283_v53 = vld [vmem:[#allocation9 + $0x3d0] sm:$0xff]  ;;  %v216_v55 = vld [vmem:[#allocation9 + $0x1b8] sm:$0xff]  ;;  %v278_v56 = vld [vmem:[#allocation9 + $0x3a8] sm:$0xff]  ;;  %v381_v58 = vpack.c.bf16 %v219_v50, %v217_v49 }
  0x76   :  { %474 = vmatpush1.bf16.msra.mxu0 %v355_v22  ;;  %v280_v57 = vld [vmem:[#allocation9 + $0x3b8] sm:$0xff]  ;;  %v413_v59 = vpack.c.bf16 %v283_v53, %v281_v51  ;;  %v380_v60 = vpack.c.bf16 %v216_v55, %v214_v54  ;;  %v213_v61 = vld [vmem:[#allocation9 + $0x1a0] sm:$0xff]  ;;  %v215_v62 = vld [vmem:[#allocation9 + $0x1b0] sm:$0xff] }
  0x77   :  { %475 = vmatprep.subr.bf16.mxu0 %v354_v24  ;;  %v277_v63 = vld [vmem:[#allocation9 + $0x3a0] sm:$0xff]  ;;  %v412_v0 = vpack.c.bf16 %v280_v57, %v278_v56  ;;  %v279_v1 = vld [vmem:[#allocation9 + $0x3b0] sm:$0xff]  ;;  %v210_v2 = vld [vmem:[#allocation9 + $0x188] sm:$0xff]  ;;  %v379_v6 = vpack.c.bf16 %v215_v62, %v213_v61 }
  0x78   :  { %517 = vmatpush1.bf16.msra.mxu1 %v387_v23  ;;  %v212_v3 = vld [vmem:[#allocation9 + $0x198] sm:$0xff]  ;;  %v274_v4 = vld [vmem:[#allocation9 + $0x388] sm:$0xff]  ;;  %v209_v7 = vld [vmem:[#allocation9 + $0x180] sm:$0xff]  ;;  %v411_v9 = vpack.c.bf16 %v279_v1, %v277_v63 }
  0x79   :  { %518 = vmatprep.subr.bf16.mxu1 %v386_v28  ;;  %v276_v5 = vld [vmem:[#allocation9 + $0x398] sm:$0xff]  ;;  %v211_v8 = vld [vmem:[#allocation9 + $0x190] sm:$0xff]  ;;  %v378_v10 = vpack.c.bf16 %v212_v3, %v210_v2  ;;  %v273_v11 = vld [vmem:[#allocation9 + $0x380] sm:$0xff] }
  0x7a   :  { %476 = vmatpush1.bf16.msra.mxu0 %v353_v34  ;;  %v275_v12 = vld [vmem:[#allocation9 + $0x390] sm:$0xff]  ;;  %v206_v13 = vld [vmem:[#allocation9 + $0x168] sm:$0xff]  ;;  %v410_v14 = vpack.c.bf16 %v276_v5, %v274_v4  ;;  %v208_v15 = vld [vmem:[#allocation9 + $0x178] sm:$0xff]  ;;  %v377_v21 = vpack.c.bf16 %v211_v8, %v209_v7 }
  0x7b   :  { %477 = vmatprep.subr.bf16.mxu0 %v384_v36  ;;  %v132_v16 = vld [vmem:[#allocation2 + $0x8] sm:$0xff]  ;;  %v138_v17 = vld [vmem:[#allocation2 + $0x38] sm:$0xff]  ;;  %v205_v22 = vld [vmem:[#allocation9 + $0x160] sm:$0xff]  ;;  %v409_v24 = vpack.c.bf16 %v275_v12, %v273_v11  ;;  %v376_v25 = vpack.c.bf16 %v208_v15, %v206_v13 }
  0x7c   :  { %519 = vmatpush1.bf16.msra.mxu1 %v385_v35  ;;  %v270_v18 = vld [vmem:[#allocation9 + $0x368] sm:$0xff]  ;;  %v272_v19 = vld [vmem:[#allocation9 + $0x378] sm:$0xff]  ;;  %v1910_v20 = vpack.c.bf16 %v138_v17, %v132_v16  ;;  %v207_v26 = vld [vmem:[#allocation9 + $0x170] sm:$0xff] }
  0x7d   :  { %520 = vmatprep.subr.bf16.mxu1 %v416_v40  ;;  %v134_v23 = vld [vmem:[#allocation2 + $0x18] sm:$0xff]  ;;  %v269_v27 = vld [vmem:[#allocation9 + $0x360] sm:$0xff]  ;;  %v140_v28 = vld [vmem:[#allocation2 + $0x48] sm:$0xff]  ;;  %v408_v29 = vpack.c.bf16 %v272_v19, %v270_v18  ;;  %v375_v36 = vpack.c.bf16 %v207_v26, %v205_v22 }
  0x7e   :  { %478 = vmatpush2.bf16.msra.mxu0 %v383_v46  ;;  %v271_v30 = vld [vmem:[#allocation9 + $0x370] sm:$0xff]  ;;  %v202_v31 = vld [vmem:[#allocation9 + $0x148] sm:$0xff]  ;;  %v204_v32 = vld [vmem:[#allocation9 + $0x158] sm:$0xff]  ;;  %493 = vmatprep.mubr.bf16.mxu0 %v1910_v20  ;;  %v1913_v33 = vpack.c.bf16 %v140_v28, %v134_v23 }
  0x7f   :  { %479 = vmatprep.subr.bf16.mxu0 %v382_v48  ;;  %v266_v34 = vld [vmem:[#allocation9 + $0x348] sm:$0xff]  ;;  %v268_v35 = vld [vmem:[#allocation9 + $0x358] sm:$0xff]  ;;  %v407_v37 = vpack.c.bf16 %v271_v30, %v269_v27  ;;  %v374_v38 = vpack.c.bf16 %v204_v32, %v202_v31  ;;  %v201_v39 = vld [vmem:[#allocation9 + $0x140] sm:$0xff] }
  0x80   :  { %521 = vmatpush2.bf16.msra.mxu1 %v415_v47  ;;  %536 = vmatprep.mubr.bf16.mxu1 %v1913_v33  ;;  %v203_v40 = vld [vmem:[#allocation9 + $0x150] sm:$0xff]  ;;  %v265_v41 = vld [vmem:[#allocation9 + $0x340] sm:$0xff]  ;;  %v406_v42 = vpack.c.bf16 %v268_v35, %v266_v34  ;;  %v198_v44 = vld [vmem:[#allocation9 + $0x128] sm:$0xff] }
  0x81   :  { %522 = vmatprep.subr.bf16.mxu1 %v414_v52  ;;  %v267_v43 = vld [vmem:[#allocation9 + $0x350] sm:$0xff]  ;;  %v200_v45 = vld [vmem:[#allocation9 + $0x138] sm:$0xff]  ;;  %v262_v46 = vld [vmem:[#allocation9 + $0x328] sm:$0xff]  ;;  %v373_v48 = vpack.c.bf16 %v203_v40, %v201_v39 }
  0x82   :  { %480 = vmatpush2.bf16.msra.mxu0 %v381_v58  ;;  %v264_v47 = vld [vmem:[#allocation9 + $0x338] sm:$0xff]  ;;  %v405_v49 = vpack.c.bf16 %v267_v43, %v265_v41  ;;  %v372_v50 = vpack.c.bf16 %v200_v45, %v198_v44  ;;  %v197_v51 = vld [vmem:[#allocation9 + $0x120] sm:$0xff]  ;;  %v199_v52 = vld [vmem:[#allocation9 + $0x130] sm:$0xff] }
  0x83   :  { %481 = vmatprep.subr.bf16.mxu0 %v380_v60  ;;  %v261_v53 = vld [vmem:[#allocation9 + $0x320] sm:$0xff]  ;;  %v404_v54 = vpack.c.bf16 %v264_v47, %v262_v46  ;;  %v263_v55 = vld [vmem:[#allocation9 + $0x330] sm:$0xff]  ;;  %v194_v56 = vld [vmem:[#allocation9 + $0x108] sm:$0xff]  ;;  %v371_v60 = vpack.c.bf16 %v199_v52, %v197_v51 }
  0x84   :  { %523 = vmatpush2.bf16.msra.mxu1 %v413_v59  ;;  %v196_v57 = vld [vmem:[#allocation9 + $0x118] sm:$0xff]  ;;  %v258_v58 = vld [vmem:[#allocation9 + $0x308] sm:$0xff]  ;;  %v403_v61 = vpack.c.bf16 %v263_v55, %v261_v53  ;;  %v193_v63 = vld [vmem:[#allocation9 + $0x100] sm:$0xff] }
  0x85   :  { %524 = vmatprep.subr.bf16.mxu1 %v412_v0  ;;  %v260_v59 = vld [vmem:[#allocation9 + $0x318] sm:$0xff]  ;;  %v370_v62 = vpack.c.bf16 %v196_v57, %v194_v56  ;;  %v195_v0 = vld [vmem:[#allocation9 + $0x110] sm:$0xff]  ;;  %v257_v1 = vld [vmem:[#allocation9 + $0x300] sm:$0xff] }
  0x86   :  { %482 = vmatpush2.bf16.msra.mxu0 %v379_v6  ;;  %v402_v2 = vpack.c.bf16 %v260_v59, %v258_v58  ;;  %v259_v3 = vld [vmem:[#allocation9 + $0x310] sm:$0xff]  ;;  %v318_v4 = vld [vmem:[#allocation9 + $0x4e8] sm:$0xff]  ;;  %v320_v5 = vld [vmem:[#allocation9 + $0x4f8] sm:$0xff]  ;;  %v369_v6 = vpack.c.bf16 %v195_v0, %v193_v63 }
  0x87   :  { %483 = vmatprep.subr.bf16.mxu0 %v378_v10  ;;  %v131_v7 = vld [vmem:[#allocation2] sm:$0xff]  ;;  %v137_v8 = vld [vmem:[#allocation2 + $0x30] sm:$0xff]  ;;  %v401_v10 = vpack.c.bf16 %v259_v3, %v257_v1  ;;  %v432_v11 = vpack.c.bf16 %v320_v5, %v318_v4  ;;  %v314_v15 = vld [vmem:[#allocation9 + $0x4c8] sm:$0xff] }
  0x88   :  { %525 = vmatpush2.bf16.msra.mxu1 %v411_v9  ;;  %v317_v9 = vld [vmem:[#allocation9 + $0x4e0] sm:$0xff]  ;;  %v319_v12 = vld [vmem:[#allocation9 + $0x4f0] sm:$0xff]  ;;  %v316_v16 = vld [vmem:[#allocation9 + $0x4d8] sm:$0xff]  ;;  %v1916_v17 = vpack.c.bf16 %v137_v8, %v131_v7 }
  0x89   :  { %526 = vmatprep.subr.bf16.mxu1 %v410_v14  ;;  %v133_v13 = vld [vmem:[#allocation2 + $0x10] sm:$0xff]  ;;  %v139_v14 = vld [vmem:[#allocation2 + $0x40] sm:$0xff]  ;;  %v431_v18 = vpack.c.bf16 %v319_v12, %v317_v9  ;;  %v136_v26 = vld [vmem:[#allocation2 + $0x28] sm:$0xff] }
  0x8a   :  { %484 = vmatpush2.bf16.msra.mxu0 %v377_v21  ;;  %v1918_v19 = vpack.c.bf16 %v139_v14, %v133_v13  ;;  %v430_v21 = vpack.c.bf16 %v316_v16, %v314_v15  ;;  %v313_v22 = vld [vmem:[#allocation9 + $0x4c0] sm:$0xff]  ;;  %v315_v23 = vld [vmem:[#allocation9 + $0x4d0] sm:$0xff]  ;;  %v142_v27 = vld [vmem:[#allocation2 + $0x58] sm:$0xff] }
  0x8b   :  { %485 = vmatprep.subr.bf16.mxu0 %v376_v25  ;;  %v312_v25 = vld [vmem:[#allocation9 + $0x4b8] sm:$0xff]  ;;  %v429_v28 = vpack.c.bf16 %v315_v23, %v313_v22  ;;  %v309_v31 = vld [vmem:[#allocation9 + $0x4a0] sm:$0xff]  ;;  %v311_v32 = vld [vmem:[#allocation9 + $0x4b0] sm:$0xff] }
  0x8c   :  { %527 = vmatpush2.bf16.msra.mxu1 %v409_v24  ;;  %v310_v24 = vld [vmem:[#allocation9 + $0x4a8] sm:$0xff]  ;;  %v308_v35 = vld [vmem:[#allocation9 + $0x498] sm:$0xff]  ;;  %v307_v39 = vld [vmem:[#allocation9 + $0x490] sm:$0xff] }
  0x8d   :  { %528 = vmatprep.subr.bf16.mxu1 %v408_v29  ;;  %v1922_v29 = vpack.c.bf16 %v142_v27, %v136_v26  ;;  %v428_v30 = vpack.c.bf16 %v312_v25, %v310_v24  ;;  %v306_v34 = vld [vmem:[#allocation9 + $0x488] sm:$0xff]  ;;  %v304_v41 = vld [vmem:[#allocation9 + $0x478] sm:$0xff]  ;;  %v301_v44 = vld [vmem:[#allocation9 + $0x460] sm:$0xff] }
  0x8e   :  { %486 = vmatpush2.bf16.msra.mxu0 %v375_v36  ;;  %v427_v36 = vpack.c.bf16 %v311_v32, %v309_v31  ;;  %v302_v40 = vld [vmem:[#allocation9 + $0x468] sm:$0xff]  ;;  %v303_v45 = vld [vmem:[#allocation9 + $0x470] sm:$0xff]  ;;  %v300_v47 = vld [vmem:[#allocation9 + $0x458] sm:$0xff] }
  0x8f   :  { %487 = vmatprep.subr.bf16.mxu0 %v374_v38  ;;  %v305_v38 = vld [vmem:[#allocation9 + $0x480] sm:$0xff]  ;;  %v424_v43 = vpack.c.bf16 %v304_v41, %v302_v40  ;;  %v298_v46 = vld [vmem:[#allocation9 + $0x448] sm:$0xff]  ;;  %v299_v51 = vld [vmem:[#allocation9 + $0x450] sm:$0xff] }
  0x90   :  { %529 = vmatpush2.bf16.msra.mxu1 %v407_v37  ;;  %v426_v37 = vpack.c.bf16 %v308_v35, %v306_v34  ;;  %v294_v52 = vld [vmem:[#allocation9 + $0x428] sm:$0xff]  ;;  %v296_v53 = vld [vmem:[#allocation9 + $0x438] sm:$0xff]  ;;  %v293_v56 = vld [vmem:[#allocation9 + $0x420] sm:$0xff] }
  0x91   :  { %530 = vmatprep.subr.bf16.mxu1 %v406_v42  ;;  %v425_v42 = vpack.c.bf16 %v307_v39, %v305_v38  ;;  %v420_v55 = vpack.c.bf16 %v296_v53, %v294_v52  ;;  %v295_v57 = vld [vmem:[#allocation9 + $0x430] sm:$0xff]  ;;  %v290_v58 = vld [vmem:[#allocation9 + $0x408] sm:$0xff]  ;;  %v292_v59 = vld [vmem:[#allocation9 + $0x418] sm:$0xff] }
  0x92   :  { %488 = vmatpush2.bf16.msra.mxu0 %v373_v48  ;;  %v423_v48 = vpack.c.bf16 %v303_v45, %v301_v44  ;;  %v291_v63 = vld [vmem:[#allocation9 + $0x410] sm:$0xff]  ;;  %v350_v0 = vld [vmem:[#allocation9 + $0x5e8] sm:$0xff]  ;;  %v352_v1 = vld [vmem:[#allocation9 + $0x5f8] sm:$0xff] }
  0x93   :  { %489 = vmatprep.subr.bf16.mxu0 %v372_v50  ;;  %v297_v50 = vld [vmem:[#allocation9 + $0x440] sm:$0xff]  ;;  %v448_v3 = vpack.c.bf16 %v352_v1, %v350_v0  ;;  %v351_v5 = vld [vmem:[#allocation9 + $0x5f0] sm:$0xff]  ;;  %v348_v7 = vld [vmem:[#allocation9 + $0x5d8] sm:$0xff] }
  0x94   :  { %531 = vmatpush2.bf16.msra.mxu1 %v405_v49  ;;  %v422_v49 = vpack.c.bf16 %v300_v47, %v298_v46  ;;  %v349_v4 = vld [vmem:[#allocation9 + $0x5e0] sm:$0xff]  ;;  %v342_v12 = vld [vmem:[#allocation9 + $0x5a8] sm:$0xff]  ;;  %v344_v13 = vld [vmem:[#allocation9 + $0x5b8] sm:$0xff] }
  0x95   :  { %532 = vmatprep.subr.bf16.mxu1 %v404_v54  ;;  %v421_v54 = vpack.c.bf16 %v299_v51, %v297_v50  ;;  %v447_v8 = vpack.c.bf16 %v351_v5, %v349_v4  ;;  %v444_v15 = vpack.c.bf16 %v344_v13, %v342_v12  ;;  %v341_v16 = vld [vmem:[#allocation9 + $0x5a0] sm:$0xff]  ;;  %v340_v22 = vld [vmem:[#allocation9 + $0x598] sm:$0xff]  ;;  %v339_v26 = vld [vmem:[#allocation9 + $0x590] sm:$0xff] }
  0x96   :  { %490 = vmatpush2.bf16.msra.mxu0 %v371_v60  ;;  %v419_v60 = vpack.c.bf16 %v295_v57, %v293_v56  ;;  %v337_v25 = vld [vmem:[#allocation9 + $0x580] sm:$0xff]  ;;  %v334_v27 = vld [vmem:[#allocation9 + $0x568] sm:$0xff]  ;;  %v335_v34 = vld [vmem:[#allocation9 + $0x570] sm:$0xff] }
  0x97   :  { %491 = vmatprep.subr.bf16.mxu0 %v370_v62  ;;  %v289_v62 = vld [vmem:[#allocation9 + $0x400] sm:$0xff]  ;;  %v330_v35 = vld [vmem:[#allocation9 + $0x548] sm:$0xff]  ;;  %v331_v40 = vld [vmem:[#allocation9 + $0x550] sm:$0xff] }
  0x98   :  { %533 = vmatpush2.bf16.msra.mxu1 %v403_v61  ;;  %v418_v61 = vpack.c.bf16 %v292_v59, %v290_v58  ;;  %v333_v32 = vld [vmem:[#allocation9 + $0x560] sm:$0xff]  ;;  %v326_v41 = vld [vmem:[#allocation9 + $0x528] sm:$0xff]  ;;  %v327_v46 = vld [vmem:[#allocation9 + $0x530] sm:$0xff] }
  0x99   :  { %534 = vmatprep.subr.bf16.mxu1 %v402_v2  ;;  %v417_v2 = vpack.c.bf16 %v291_v63, %v289_v62  ;;  %v329_v39 = vld [vmem:[#allocation9 + $0x540] sm:$0xff]  ;;  %v322_v47 = vld [vmem:[#allocation9 + $0x508] sm:$0xff]  ;;  %v323_v52 = vld [vmem:[#allocation9 + $0x510] sm:$0xff] }
  0x9a   :  { %492 = vmatpush2.bf16.msra.mxu0 %v369_v6  ;;  %v346_v6 = vld [vmem:[#allocation9 + $0x5c8] sm:$0xff]  ;;  %v325_v45 = vld [vmem:[#allocation9 + $0x520] sm:$0xff]  ;;  %v658_v57 = vld [vmem:[#allocation11 + $0xf0] sm:$0xff] }
  0x9b   :  { %547 = vmatprep.subr.bf16.mxu0 %v432_v11  ;;  %v446_v9 = vpack.c.bf16 %v348_v7, %v346_v6  ;;  %v347_v11 = vld [vmem:[#allocation9 + $0x5d0] sm:$0xff]  ;;  %v321_v51 = vld [vmem:[#allocation9 + $0x500] sm:$0xff]  ;;  %v659_v58 = vld [vmem:[#allocation11 + $0xf8] sm:$0xff] }
  0x9c   :  { %535 = vmatpush2.bf16.msra.mxu1 %v401_v10  ;;  %v345_v10 = vld [vmem:[#allocation9 + $0x5c0] sm:$0xff]  ;;  %v433_v53 = vpack.c.bf16 %v323_v52, %v321_v51  ;;  %v675_v59 = vpack.c.bf16 %v659_v58, %v658_v57  ;;  %v657_v0 = vld [vmem:[#allocation11 + $0xe8] sm:$0xff]  ;;  %v654_v5 = vld [vmem:[#allocation11 + $0xd0] sm:$0xff] }
  0x9d   :  { %494 = vmatmul.mubr.bf16.vlgmr.msra.gmra.mxu0 %v1916_v17  ;;  %v445_v14 = vpack.c.bf16 %v347_v11, %v345_v10  ;;  %v656_v63 = vld [vmem:[#allocation11 + $0xe0] sm:$0xff]  ;;  %v655_v6 = vld [vmem:[#allocation11 + $0xd8] sm:$0xff]  ;;  %v653_v11 = vld [vmem:[#allocation11 + $0xc8] sm:$0xff] }
  0x9e   :  { %548 = vmatpush1.bf16.msra.mxu0 %v431_v18  ;;  %579 = vmatprep.mubr.bf16.mxu0 %v1922_v29  ;;  %v343_v18 = vld [vmem:[#allocation9 + $0x5b0] sm:$0xff]  ;;  %v674_v1 = vpack.c.bf16 %v657_v0, %v656_v63  ;;  %v673_v7 = vpack.c.bf16 %v655_v6, %v654_v5  ;;  %v652_v10 = vld [vmem:[#allocation11 + $0xc0] sm:$0xff] }
  0x9f   :  { %537 = vmatmul.mubr.bf16.vlgmr.msra.gmra.mxu1 %v1918_v19  ;;  %549 = vmatprep.subr.bf16.mxu0 %v430_v21  ;;  %v338_v21 = vld [vmem:[#allocation9 + $0x588] sm:$0xff]  ;;  %v443_v23 = vpack.c.bf16 %v343_v18, %v341_v16  ;;  %v672_v12 = vpack.c.bf16 %v653_v11, %v652_v10  ;;  %v636_v13 = vld [vmem:[#allocation11 + $0x40] sm:$0xff]  ;;  %v650_v16 = vld [vmem:[#allocation11 + $0xb0] sm:$0xff] }
  0xa0   :  { %v442_v24 = vpack.c.bf16 %v340_v22, %v338_v21  ;;  %1517 = vmatprep.subr.bf16.mxu1 %v675_v59  ;;  %v651_v18 = vld [vmem:[#allocation11 + $0xb8] sm:$0xff]  ;;  %v634_v22 = vld [vmem:[#allocation11 + $0x30] sm:$0xff]  ;;  %v822_v51 = vld [vmem:[#allocation6 + $0x2e0] sm:$0xff] }
  0xa1   :  { %v671_v21 = vpack.c.bf16 %v651_v18, %v650_v16  ;;  %v824_v52 = vld [vmem:[#allocation6 + $0x2f0] sm:$0xff]  ;;  %v818_v58 = vld [vmem:[#allocation6 + $0x2c0] sm:$0xff] }
  0xa2   :  { %550 = vmatpush1.bf16.msra.mxu0 %v429_v28  ;;  %v336_v28 = vld [vmem:[#allocation9 + $0x578] sm:$0xff]  ;;  %v820_v59 = vld [vmem:[#allocation6 + $0x2d0] sm:$0xff]  ;;  %v814_v0 = vld [vmem:[#allocation6 + $0x2a0] sm:$0xff] }
  0xa3   :  { %551 = vmatprep.subr.bf16.mxu0 %v428_v30  ;;  %v441_v30 = vpack.c.bf16 %v339_v26, %v337_v25  ;;  %v440_v31 = vpack.c.bf16 %v336_v28, %v334_v27  ;;  %v648_v25 = vld [vmem:[#allocation11 + $0xa0] sm:$0xff]  ;;  %v649_v26 = vld [vmem:[#allocation11 + $0xa8] sm:$0xff] }
  0xa4   :  { %v670_v27 = vpack.c.bf16 %v649_v26, %v648_v25  ;;  %v632_v28 = vld [vmem:[#allocation11 + $0x20] sm:$0xff] }
  0xa5   :  { %v810_v6 = vld [vmem:[#allocation6 + $0x280] sm:$0xff] }
  0xa6   :  { %552 = vmatpush1.bf16.msra.mxu0 %v427_v36  ;;  %v332_v36 = vld [vmem:[#allocation9 + $0x558] sm:$0xff]  ;;  %v806_v11 = vld [vmem:[#allocation6 + $0x260] sm:$0xff] }
  0xa7   :  { %553 = vmatprep.subr.bf16.mxu0 %v426_v37  ;;  %v439_v37 = vpack.c.bf16 %v335_v34, %v333_v32  ;;  %v438_v38 = vpack.c.bf16 %v332_v36, %v330_v35  ;;  %v646_v32 = vld [vmem:[#allocation11 + $0x90] sm:$0xff]  ;;  %v647_v34 = vld [vmem:[#allocation11 + $0x98] sm:$0xff]  ;;  %v802_v18 = vld [vmem:[#allocation6 + $0x240] sm:$0xff] }
  0xa8   :  { %v669_v35 = vpack.c.bf16 %v647_v34, %v646_v32  ;;  %v630_v36 = vld [vmem:[#allocation11 + $0x10] sm:$0xff]  ;;  %v798_v26 = vld [vmem:[#allocation6 + $0x220] sm:$0xff] }
  0xa9   :  { %v794_v34 = vld [vmem:[#allocation6 + $0x200] sm:$0xff] }
  0xaa   :  { %554 = vmatpush1.bf16.msra.mxu0 %v425_v42  ;;  %v328_v42 = vld [vmem:[#allocation9 + $0x538] sm:$0xff] }
  0xab   :  { %555 = vmatprep.subr.bf16.mxu0 %v424_v43  ;;  %v437_v43 = vpack.c.bf16 %v331_v40, %v329_v39  ;;  %v436_v44 = vpack.c.bf16 %v328_v42, %v326_v41  ;;  %v644_v39 = vld [vmem:[#allocation11 + $0x80] sm:$0xff]  ;;  %v645_v40 = vld [vmem:[#allocation11 + $0x88] sm:$0xff] }
  0xac   :  { %v668_v41 = vpack.c.bf16 %v645_v40, %v644_v39  ;;  %v628_v42 = vld [vmem:[#allocation11] sm:$0xff] }
  0xad   :  { %v854_v40 = vld [vmem:[#allocation6 + $0x3e0] sm:$0xff] }
  0xae   :  { %556 = vmatpush1.bf16.msra.mxu0 %v423_v48  ;;  %v324_v48 = vld [vmem:[#allocation9 + $0x518] sm:$0xff] }
  0xaf   :  { %557 = vmatprep.subr.bf16.mxu0 %v422_v49  ;;  %v435_v49 = vpack.c.bf16 %v327_v46, %v325_v45  ;;  %v434_v50 = vpack.c.bf16 %v324_v48, %v322_v47  ;;  %v759_v45 = vld [vmem:[#allocation6 + $0xe8] sm:$0xff]  ;;  %v761_v46 = vld [vmem:[#allocation6 + $0xf8] sm:$0xff] }
  0xb0   :  { %v937_v47 = vpack.c.bf16 %v761_v46, %v759_v45  ;;  %v823_v48 = vld [vmem:[#allocation6 + $0x2e8] sm:$0xff]  ;;  %v850_v46 = vld [vmem:[#allocation6 + $0x3c0] sm:$0xff] }
  0xb2   :  { %558 = vmatpush1.bf16.msra.mxu0 %v421_v54  ;;  %v135_v54 = vld [vmem:[#allocation2 + $0x20] sm:$0xff] }
  0xb3   :  { %559 = vmatprep.subr.bf16.mxu0 %v420_v55  ;;  %v141_v55 = vld [vmem:[#allocation2 + $0x50] sm:$0xff] }
  0xb4   :  { %v1925_v56 = vpack.c.bf16 %v141_v55, %v135_v54  ;;  %v819_v54 = vld [vmem:[#allocation6 + $0x2c8] sm:$0xff]  ;;  %v821_v55 = vld [vmem:[#allocation6 + $0x2d8] sm:$0xff] }
  0xb5   :  { %v967_v57 = vpack.c.bf16 %v821_v55, %v819_v54  ;;  %v843_v55 = vld [vmem:[#allocation6 + $0x388] sm:$0xff] }
  0xb6   :  { %560 = vmatpush1.bf16.msra.mxu0 %v419_v60  ;;  %v642_v60 = vld [vmem:[#allocation11 + $0x70] sm:$0xff] }
  0xb7   :  { %561 = vmatprep.subr.bf16.mxu0 %v418_v61  ;;  %v643_v61 = vld [vmem:[#allocation11 + $0x78] sm:$0xff] }
  0xb8   :  { %v667_v62 = vpack.c.bf16 %v643_v61, %v642_v60  ;;  %v966_v60 = vpack.c.bf16 %v820_v59, %v818_v58  ;;  %v815_v61 = vld [vmem:[#allocation6 + $0x2a8] sm:$0xff]  ;;  %v842_v59 = vld [vmem:[#allocation6 + $0x380] sm:$0xff] }
  0xba   :  { %562 = vmatpush1.bf16.msra.mxu0 %v417_v2  ;;  %1518 = vmatpush3.bf16.msra.mxu1 %v667_v62  ;;  %v640_v2 = vld [vmem:[#allocation11 + $0x60] sm:$0xff]  ;;  %v817_v62 = vld [vmem:[#allocation6 + $0x2b8] sm:$0xff] }
  0xbb   :  { %563 = vmatprep.subr.bf16.mxu0 %v448_v3  ;;  %v641_v3 = vld [vmem:[#allocation11 + $0x68] sm:$0xff]  ;;  %1519 = vmatprep.subr.bf16.mxu1 %v674_v1  ;;  %v965_v63 = vpack.c.bf16 %v817_v62, %v815_v61  ;;  %v816_v1 = vld [vmem:[#allocation6 + $0x2b0] sm:$0xff] }
  0xbc   :  { %v666_v4 = vpack.c.bf16 %v641_v3, %v640_v2  ;;  %v964_v2 = vpack.c.bf16 %v816_v1, %v814_v0  ;;  %v811_v3 = vld [vmem:[#allocation6 + $0x288] sm:$0xff]  ;;  %v838_v1 = vld [vmem:[#allocation6 + $0x360] sm:$0xff] }
  0xbd   :  { %v839_v62 = vld [vmem:[#allocation6 + $0x368] sm:$0xff] }
  0xbe   :  { %564 = vmatpush2.bf16.msra.mxu0 %v447_v8  ;;  %1520 = vmatpush3.bf16.msra.mxu1 %v666_v4  ;;  %v639_v8 = vld [vmem:[#allocation11 + $0x58] sm:$0xff] }
  0xbf   :  { %565 = vmatprep.subr.bf16.mxu0 %v446_v9  ;;  %1521 = vmatprep.subr.bf16.mxu1 %v673_v7  ;;  %v813_v4 = vld [vmem:[#allocation6 + $0x298] sm:$0xff]  ;;  %v812_v7 = vld [vmem:[#allocation6 + $0x290] sm:$0xff] }
  0xc0   :  { %v963_v5 = vpack.c.bf16 %v813_v4, %v811_v3  ;;  %v835_v4 = vld [vmem:[#allocation6 + $0x348] sm:$0xff] }
  0xc2   :  { %566 = vmatpush2.bf16.msra.mxu0 %v445_v14  ;;  %v637_v14 = vld [vmem:[#allocation11 + $0x48] sm:$0xff] }
  0xc3   :  { %567 = vmatprep.subr.bf16.mxu0 %v444_v15  ;;  %v664_v15 = vpack.c.bf16 %v637_v14, %v636_v13  ;;  %v803_v14 = vld [vmem:[#allocation6 + $0x248] sm:$0xff] }
  0xc6   :  { %568 = vmatpush2.bf16.msra.mxu0 %v443_v23  ;;  %v635_v23 = vld [vmem:[#allocation11 + $0x38] sm:$0xff] }
  0xc7   :  { %569 = vmatprep.subr.bf16.mxu0 %v442_v24  ;;  %v663_v24 = vpack.c.bf16 %v635_v23, %v634_v22  ;;  %v799_v23 = vld [vmem:[#allocation6 + $0x228] sm:$0xff] }
  0xca   :  { %570 = vmatpush2.bf16.msra.mxu0 %v441_v30  ;;  %v633_v30 = vld [vmem:[#allocation11 + $0x28] sm:$0xff] }
  0xcb   :  { %571 = vmatprep.subr.bf16.mxu0 %v440_v31  ;;  %v662_v31 = vpack.c.bf16 %v633_v30, %v632_v28  ;;  %v795_v30 = vld [vmem:[#allocation6 + $0x208] sm:$0xff] }
  0xce   :  { %572 = vmatpush2.bf16.msra.mxu0 %v439_v37  ;;  %v631_v37 = vld [vmem:[#allocation11 + $0x18] sm:$0xff] }
  0xcf   :  { %573 = vmatprep.subr.bf16.mxu0 %v438_v38  ;;  %v661_v38 = vpack.c.bf16 %v631_v37, %v630_v36  ;;  %v855_v37 = vld [vmem:[#allocation6 + $0x3e8] sm:$0xff] }
  0xd2   :  { %574 = vmatpush2.bf16.msra.mxu0 %v437_v43  ;;  %v629_v43 = vld [vmem:[#allocation11 + $0x8] sm:$0xff] }
  0xd3   :  { %575 = vmatprep.subr.bf16.mxu0 %v436_v44  ;;  %v660_v44 = vpack.c.bf16 %v629_v43, %v628_v42  ;;  %v851_v43 = vld [vmem:[#allocation6 + $0x3c8] sm:$0xff] }
  0xd6   :  { %576 = vmatpush2.bf16.msra.mxu0 %v435_v49  ;;  %v825_v49 = vld [vmem:[#allocation6 + $0x2f8] sm:$0xff] }
  0xd7   :  { %577 = vmatprep.subr.bf16.mxu0 %v434_v50  ;;  %v969_v50 = vpack.c.bf16 %v825_v49, %v823_v48  ;;  %v847_v49 = vld [vmem:[#allocation6 + $0x3a8] sm:$0xff] }
  0xda   :  { %578 = vmatpush2.bf16.msra.mxu0 %v433_v53  ;;  %v968_v53 = vpack.c.bf16 %v824_v52, %v822_v51  ;;  %v846_v52 = vld [vmem:[#allocation6 + $0x3a0] sm:$0xff] }
  0xdb   :  { %1083 = vmatprep.subr.bf16.mxu0 %v969_v50  ;;  %v849_v50 = vld [vmem:[#allocation6 + $0x3b8] sm:$0xff] }
  0xdc   :  { %v981_v51 = vpack.c.bf16 %v849_v50, %v847_v49 }
  0xdd   :  { %580 = vmatmul.mubr.bf16.vlgmr.msra.gmra.mxu0 %v1925_v56 }
  0xde   :  { %1115 = vmatprep.mubr.bf16.mxu0 %v1913_v33  ;;  %v638_v33 = vld [vmem:[#allocation11 + $0x50] sm:$0xff]  ;;  %1084 = vmatpush1.bf16.msra.mxu0 %v968_v53 }
  0xdf   :  { %v665_v9 = vpack.c.bf16 %v639_v8, %v638_v33  ;;  %1085 = vmatprep.subr.bf16.mxu0 %v967_v57  ;;  %v962_v33 = vpack.c.bf16 %v812_v7, %v810_v6  ;;  %v807_v8 = vld [vmem:[#allocation6 + $0x268] sm:$0xff]  ;;  %v848_v53 = vld [vmem:[#allocation6 + $0x3b0] sm:$0xff]  ;;  %v845_v57 = vld [vmem:[#allocation6 + $0x398] sm:$0xff] }
  0xe0   :  { %v980_v54 = vpack.c.bf16 %v848_v53, %v846_v52  ;;  %v979_v58 = vpack.c.bf16 %v845_v57, %v843_v55  ;;  %v834_v7 = vld [vmem:[#allocation6 + $0x340] sm:$0xff] }
  0xe1   :  { %1522 = vmatpush3.bf16.msra.mxu1 %v665_v9  ;;  %v809_v9 = vld [vmem:[#allocation6 + $0x278] sm:$0xff] }
  0xe2   :  { %1523 = vmatprep.subr.bf16.mxu1 %v672_v12  ;;  %1086 = vmatpush1.bf16.msra.mxu0 %v966_v60  ;;  %v961_v10 = vpack.c.bf16 %v809_v9, %v807_v8  ;;  %v808_v12 = vld [vmem:[#allocation6 + $0x270] sm:$0xff]  ;;  %v831_v9 = vld [vmem:[#allocation6 + $0x328] sm:$0xff] }
  0xe3   :  { %1087 = vmatprep.subr.bf16.mxu0 %v965_v63  ;;  %v960_v13 = vpack.c.bf16 %v808_v12, %v806_v11  ;;  %v844_v60 = vld [vmem:[#allocation6 + $0x390] sm:$0xff]  ;;  %v841_v63 = vld [vmem:[#allocation6 + $0x378] sm:$0xff]  ;;  %v830_v12 = vld [vmem:[#allocation6 + $0x320] sm:$0xff] }
  0xe4   :  { %v978_v61 = vpack.c.bf16 %v844_v60, %v842_v59  ;;  %v977_v0 = vpack.c.bf16 %v841_v63, %v839_v62 }
  0xe5   :  { %1524 = vmatpush3.bf16.msra.mxu1 %v664_v15  ;;  %v805_v15 = vld [vmem:[#allocation6 + $0x258] sm:$0xff] }
  0xe6   :  { %1525 = vmatprep.subr.bf16.mxu1 %v671_v21  ;;  %1088 = vmatpush1.bf16.msra.mxu0 %v964_v2  ;;  %v959_v16 = vpack.c.bf16 %v805_v15, %v803_v14  ;;  %v804_v21 = vld [vmem:[#allocation6 + $0x250] sm:$0xff]  ;;  %v827_v15 = vld [vmem:[#allocation6 + $0x308] sm:$0xff] }
  0xe7   :  { %1089 = vmatprep.subr.bf16.mxu0 %v963_v5  ;;  %v958_v22 = vpack.c.bf16 %v804_v21, %v802_v18  ;;  %v840_v2 = vld [vmem:[#allocation6 + $0x370] sm:$0xff]  ;;  %v837_v5 = vld [vmem:[#allocation6 + $0x358] sm:$0xff]  ;;  %v826_v21 = vld [vmem:[#allocation6 + $0x300] sm:$0xff] }
  0xe8   :  { %v976_v3 = vpack.c.bf16 %v840_v2, %v838_v1  ;;  %v975_v6 = vpack.c.bf16 %v837_v5, %v835_v4 }
  0xe9   :  { %1526 = vmatpush3.bf16.msra.mxu1 %v663_v24  ;;  %v801_v24 = vld [vmem:[#allocation6 + $0x238] sm:$0xff] }
  0xea   :  { %1527 = vmatprep.subr.bf16.mxu1 %v670_v27  ;;  %1090 = vmatpush1.bf16.msra.mxu0 %v962_v33  ;;  %v957_v25 = vpack.c.bf16 %v801_v24, %v799_v23  ;;  %v800_v27 = vld [vmem:[#allocation6 + $0x230] sm:$0xff]  ;;  %v451_v24 = vlaneseq }
  0xeb   :  { %1091 = vmatprep.subr.bf16.mxu0 %v961_v10  ;;  %v956_v28 = vpack.c.bf16 %v800_v27, %v798_v26  ;;  %v836_v33 = vld [vmem:[#allocation6 + $0x350] sm:$0xff]  ;;  %v833_v10 = vld [vmem:[#allocation6 + $0x338] sm:$0xff] }
  0xec   :  { %v974_v8 = vpack.c.bf16 %v836_v33, %v834_v7  ;;  %v973_v11 = vpack.c.bf16 %v833_v10, %v831_v9 }
  0xed   :  { %1528 = vmatpush3.bf16.msra.mxu1 %v662_v31  ;;  %v797_v31 = vld [vmem:[#allocation6 + $0x218] sm:$0xff] }
  0xee   :  { %1529 = vmatprep.subr.bf16.mxu1 %v669_v35  ;;  %1092 = vmatpush1.bf16.msra.mxu0 %v960_v13  ;;  %v955_v32 = vpack.c.bf16 %v797_v31, %v795_v30  ;;  %v796_v35 = vld [vmem:[#allocation6 + $0x210] sm:$0xff] }
  0xef   :  { %1093 = vmatprep.subr.bf16.mxu0 %v959_v16  ;;  %v954_v36 = vpack.c.bf16 %v796_v35, %v794_v34  ;;  %v832_v13 = vld [vmem:[#allocation6 + $0x330] sm:$0xff]  ;;  %v829_v16 = vld [vmem:[#allocation6 + $0x318] sm:$0xff] }
  0xf0   :  { %v972_v14 = vpack.c.bf16 %v832_v13, %v830_v12  ;;  %v971_v18 = vpack.c.bf16 %v829_v16, %v827_v15  ;;  %v146_v12 = vld [vmem:[#allocation2 + $0x78] sm:$0xff]  ;;  %v152_v13 = vld [vmem:[#allocation2 + $0xa8] sm:$0xff]  ;;  %v145_v16 = vld [vmem:[#allocation2 + $0x70] sm:$0xff] }
  0xf1   :  { %1530 = vmatpush3.bf16.msra.mxu1 %v661_v38  ;;  %v857_v38 = vld [vmem:[#allocation6 + $0x3f8] sm:$0xff]  ;;  %v727_v15 = vpack.c.bf16 %v152_v13, %v146_v12 }
  0xf2   :  { %1531 = vmatprep.subr.bf16.mxu1 %v668_v41  ;;  %1094 = vmatpush1.bf16.msra.mxu0 %v958_v22  ;;  %v985_v39 = vpack.c.bf16 %v857_v38, %v855_v37  ;;  %v856_v41 = vld [vmem:[#allocation6 + $0x3f0] sm:$0xff] }
  0xf3   :  { %1095 = vmatprep.subr.bf16.mxu0 %v957_v25  ;;  %v984_v42 = vpack.c.bf16 %v856_v41, %v854_v40  ;;  %v828_v22 = vld [vmem:[#allocation6 + $0x310] sm:$0xff]  ;;  %v1930_v25 = vshrl.u32 %v451_v24, 7 }
  0xf4   :  { %v970_v23 = vpack.c.bf16 %v828_v22, %v826_v21 }
  0xf5   :  { %1532 = vmatpush3.bf16.msra.mxu1 %v660_v44  ;;  %v853_v44 = vld [vmem:[#allocation6 + $0x3d8] sm:$0xff]  ;;  %v1933_v27 = vsub.s32 0, %v1930_v25  ;;  %v457_v30 = vsub.s32 1, %v1930_v25 }
  0xf6   :  { %1030 = vmatprep.subr.bf16.mxu1 %v937_v47  ;;  %1096 = vmatpush1.bf16.msra.mxu0 %v956_v28  ;;  %v983_v45 = vpack.c.bf16 %v853_v44, %v851_v43  ;;  %v852_v47 = vld [vmem:[#allocation6 + $0x3d0] sm:$0xff]  ;;  %v449_v28 = vld [vmem:[%s2028_s6] sm:$0x3] }
  0xf7   :  { %1097 = vmatprep.subr.bf16.mxu0 %v955_v32  ;;  %v982_v48 = vpack.c.bf16 %v852_v47, %v850_v46  ;;  %v454_v34 = vrot.slane %v449_v28, %v1933_v27  ;;  %v458_v35 = vrot.slane %v449_v28, %v457_v30 }
  0xfa   :  { %1098 = vmatpush1.bf16.msra.mxu0 %v954_v36 }
  0xfb   :  { %1099 = vmatprep.subr.bf16.mxu0 %v985_v39 }
  0xfe   :  { %1100 = vmatpush2.bf16.msra.mxu0 %v984_v42 }
  0xff   :  { %1101 = vmatprep.subr.bf16.mxu0 %v983_v45 }
 0x102   :  { %1102 = vmatpush2.bf16.msra.mxu0 %v982_v48 }
 0x103   :  { %1103 = vmatprep.subr.bf16.mxu0 %v981_v51 }
 0x106   :  { %1104 = vmatpush2.bf16.msra.mxu0 %v980_v54 }
 0x107   :  { %1105 = vmatprep.subr.bf16.mxu0 %v979_v58 }
 0x10a   :  { %1106 = vmatpush2.bf16.msra.mxu0 %v978_v61 }
 0x10b   :  { %1107 = vmatprep.subr.bf16.mxu0 %v977_v0 }
 0x10e   :  { %1108 = vmatpush2.bf16.msra.mxu0 %v976_v3 }
 0x10f   :  { %1109 = vmatprep.subr.bf16.mxu0 %v975_v6 }
 0x112   :  { %1110 = vmatpush2.bf16.msra.mxu0 %v974_v8 }
 0x113   :  { %1111 = vmatprep.subr.bf16.mxu0 %v973_v11 }
 0x116   :  { %1112 = vmatpush2.bf16.msra.mxu0 %v972_v14 }
 0x117   :  { %1113 = vmatprep.subr.bf16.mxu0 %v971_v18  ;;  %v151_v18 = vld [vmem:[#allocation2 + $0xa0] sm:$0xff] }
 0x118   :  { %v726_v22 = vpack.c.bf16 %v151_v18, %v145_v16  ;;  %v731_v16 = vld [vmem:[#allocation6 + $0x8] sm:$0xff]  ;;  %v733_v18 = vld [vmem:[#allocation6 + $0x18] sm:$0xff] }
 0x11a   :  { %1114 = vmatpush2.bf16.msra.mxu0 %v970_v23 }
 0x11d   :  { %1116 = vmatmul.mubr.bf16.vlgmr.msra.gmra.mxu0 %v1918_v19 }
 0x11e   :  { %1125 = vmatprep.mubr.bf16.mxu0 %v727_v15  ;;  %v736_v15 = vld [vmem:[#allocation6 + $0x30] sm:$0xff] }
 0x125   :  { %1126 = vmatmul.mubr.bf16.gmra.mxu0 %v726_v22  ;;  %v923_v22 = vpack.c.bf16 %v733_v18, %v731_v16  ;;  %v888_v18 = vld [vmem:[#allocation6 + $0x4f0] sm:$0xff] }
 0x15d   :  { %v495_v26 = vpop.f32.mrf.mxu0 }
 0x15e   :  { %v496_v37 = vadd.f32 %v495_v26, %v454_v34 }
 0x15f   :  { %v497_v31 = vpop.f32.mrf.mxu0  ;;  %v538_v32 = vpop.f32.mrf.mxu1 }
 0x160   :  { %v498_v38 = vadd.f32 %v497_v31, %v458_v35  ;;  %v539_v41 = vadd.f32 %v538_v32, %v496_v37 }
 0x161   :  { %v499_v19 = vpop.f32.mrf.mxu0  ;;  %v540_v36 = vpop.f32.mrf.mxu1 }
 0x162   :  { %v500_v42 = vadd.f32 %v499_v19, %v454_v34  ;;  %v541_v44 = vadd.f32 %v540_v36, %v498_v38  ;;  %v758_v38 = vld [vmem:[#allocation6 + $0xe0] sm:$0xff] }
 0x163   :  { %v501_v39 = vpop.f32.mrf.mxu0  ;;  %v542_v40 = vpop.f32.mrf.mxu1 }
 0x164   :  { %v502_v45 = vadd.f32 %v501_v39, %v458_v35  ;;  %v543_v49 = vadd.f32 %v542_v40, %v500_v42  ;;  %v760_v39 = vld [vmem:[#allocation6 + $0xf0] sm:$0xff]  ;;  %v755_v42 = vld [vmem:[#allocation6 + $0xc8] sm:$0xff] }
 0x165   :  { %v544_v47 = vpop.f32.mrf.mxu1 }
 0x166   :  { %v545_v53 = vadd.f32 %v544_v47, %v502_v45  ;;  %v936_v47 = vpack.c.bf16 %v760_v39, %v758_v38  ;;  %v786_v39 = vld [vmem:[#allocation6 + $0x1c0] sm:$0xff] }
 0x19d   :  { %v581_v43 = vpop.f32.mrf.mxu0 }
 0x19e   :  { %v582_v46 = vadd.f32 %v581_v43, %v539_v41  ;;  %v757_v43 = vld [vmem:[#allocation6 + $0xd8] sm:$0xff] }
 0x19f   :  { %v583_v48 = vpop.f32.mrf.mxu0 }
 0x1a0   :  { %v590_v50 = vmul.f32 %v582_v46, %v582_v46  ;;  %v584_v51 = vadd.f32 %v583_v48, %v541_v44 }
 0x1a1   :  { %v585_v52 = vpop.f32.mrf.mxu0 }
 0x1a2   :  { %v594_v54 = vmul.f32 %v590_v50, %v582_v46  ;;  %v591_v55 = vmul.f32 %v584_v51, %v584_v51  ;;  %v586_v57 = vadd.f32 %v585_v52, %v543_v49  ;;  %v935_v49 = vpack.c.bf16 %v757_v43, %v755_v42  ;;  %v754_v50 = vld [vmem:[#allocation6 + $0xc0] sm:$0xff]  ;;  %v756_v52 = vld [vmem:[#allocation6 + $0xd0] sm:$0xff]  ;;  %v785_v42 = vld [vmem:[#allocation6 + $0x1b8] sm:$0xff] }
 0x1a3   :  { %v587_v58 = vpop.f32.mrf.mxu0 }
 0x1a4   :  { %v598_v59 = vmul.f32 0.044715, %v594_v54  ;;  %v595_v60 = vmul.f32 %v591_v55, %v584_v51  ;;  %v592_v61 = vmul.f32 %v586_v57, %v586_v57  ;;  %v588_v62 = vadd.f32 %v587_v58, %v545_v53  ;;  %v751_v53 = vld [vmem:[#allocation6 + $0xa8] sm:$0xff]  ;;  %v753_v54 = vld [vmem:[#allocation6 + $0xb8] sm:$0xff]  ;;  %v752_v58 = vld [vmem:[#allocation6 + $0xb0] sm:$0xff] }
 0x1a5   :  { %v934_v55 = vpack.c.bf16 %v756_v52, %v754_v50 }
 0x1a6   :  { %v602_v63 = vadd.f32 %v598_v59, %v582_v46  ;;  %v599_v0 = vmul.f32 0.044715, %v595_v60  ;;  %v596_v1 = vmul.f32 %v592_v61, %v586_v57  ;;  %v593_v2 = vmul.f32 %v588_v62, %v588_v62  ;;  %v747_v59 = vld [vmem:[#allocation6 + $0x88] sm:$0xff] }
 0x1a8   :  { %v606_v3 = vmul.f32 0.7978846, %v602_v63  ;;  %v603_v4 = vadd.f32 %v599_v0, %v584_v51  ;;  %v600_v5 = vmul.f32 0.044715, %v596_v1  ;;  %v597_v6 = vmul.f32 %v593_v2, %v588_v62  ;;  %v748_v63 = vld [vmem:[#allocation6 + $0x90] sm:$0xff]  ;;  %v743_v0 = vld [vmem:[#allocation6 + $0x68] sm:$0xff] }
 0x1a9   :  { %v745_v1 = vld [vmem:[#allocation6 + $0x78] sm:$0xff] }
 0x1aa   :  { %v607_v7 = vmul.f32 0.7978846, %v603_v4  ;;  %v604_v33 = vadd.f32 %v600_v5, %v586_v57  ;;  %v601_v8 = vmul.f32 0.044715, %v597_v6  ;;  %1586 = vtanh.f32 %v606_v3  ;;  %v742_v4 = vld [vmem:[#allocation6 + $0x60] sm:$0xff]  ;;  %v739_v5 = vld [vmem:[#allocation6 + $0x48] sm:$0xff] }
 0x1ab   :  { %v929_v3 = vpack.c.bf16 %v745_v1, %v743_v0  ;;  %v741_v6 = vld [vmem:[#allocation6 + $0x58] sm:$0xff]  ;;  %v770_v0 = vld [vmem:[#allocation6 + $0x140] sm:$0xff]  ;;  %v772_v1 = vld [vmem:[#allocation6 + $0x150] sm:$0xff] }
 0x1ac   :  { %1588 = vtanh.f32 %v607_v7  ;;  %v608_v9 = vmul.f32 0.7978846, %v604_v33  ;;  %v605_v10 = vadd.f32 %v601_v8, %v588_v62  ;;  %v927_v33 = vpack.c.bf16 %v741_v6, %v739_v5  ;;  %v738_v8 = vld [vmem:[#allocation6 + $0x40] sm:$0xff]  ;;  %v768_v6 = vld [vmem:[#allocation6 + $0x130] sm:$0xff] }
 0x1ad   :  { %v766_v5 = vld [vmem:[#allocation6 + $0x120] sm:$0xff] }
 0x1ae   :  { %1590 = vtanh.f32 %v608_v9  ;;  %v609_v11 = vmul.f32 0.7978846, %v605_v10  ;;  %v740_v9 = vld [vmem:[#allocation6 + $0x50] sm:$0xff]  ;;  %v735_v10 = vld [vmem:[#allocation6 + $0x28] sm:$0xff] }
 0x1af   :  { %v926_v12 = vpack.c.bf16 %v740_v9, %v738_v8  ;;  %v940_v8 = vpack.c.bf16 %v768_v6, %v766_v5  ;;  %v858_v5 = vld [vmem:[#allocation6 + $0x400] sm:$0xff]  ;;  %v860_v6 = vld [vmem:[#allocation6 + $0x410] sm:$0xff] }
 0x1b0   :  { %1592 = vtanh.f32 %v609_v11  ;;  %v737_v11 = vld [vmem:[#allocation6 + $0x38] sm:$0xff] }
 0x1b1   :  { %v925_v13 = vpack.c.bf16 %v737_v11, %v735_v10  ;;  %v762_v10 = vld [vmem:[#allocation6 + $0x100] sm:$0xff]  ;;  %v764_v11 = vld [vmem:[#allocation6 + $0x110] sm:$0xff] }
 0x1b7   :  { %v1587_v14 = vpop.eup %1586 }
 0x1b8   :  { %v614_v26 = vadd.f32 1.0, %v1587_v14  ;;  %v734_v14 = vld [vmem:[#allocation6 + $0x20] sm:$0xff] }
 0x1b9   :  { %v1589_v21 = vpop.eup %1588 }
 0x1ba   :  { %v615_v23 = vadd.f32 1.0, %v1589_v21  ;;  %v618_v19 = vmul.f32 0.5, %v614_v26  ;;  %v924_v21 = vpack.c.bf16 %v736_v15, %v734_v14  ;;  %v791_v26 = vld [vmem:[#allocation6 + $0x1e8] sm:$0xff]  ;;  %v938_v14 = vpack.c.bf16 %v764_v11, %v762_v10  ;;  %v886_v15 = vld [vmem:[#allocation6 + $0x4e0] sm:$0xff]  ;;  %v920_v11 = vld [vmem:[#allocation6 + $0x5f0] sm:$0xff] }
 0x1bb   :  { %v1591_v24 = vpop.eup %1590  ;;  %v918_v10 = vld [vmem:[#allocation6 + $0x5e0] sm:$0xff] }
 0x1bc   :  { %v616_v28 = vadd.f32 1.0, %v1591_v24  ;;  %v619_v35 = vmul.f32 0.5, %v615_v23  ;;  %v622_v44 = vmul.f32 %v618_v19, %v582_v46  ;;  %v749_v46 = vld [vmem:[#allocation6 + $0x98] sm:$0xff]  ;;  %v730_v23 = vld [vmem:[#allocation6] sm:$0xff]  ;;  %v732_v24 = vld [vmem:[#allocation6 + $0x10] sm:$0xff] }
 0x1bd   :  { %v1593_v31 = vpop.eup %1592  ;;  %v931_v61 = vpack.c.bf16 %v749_v46, %v747_v59  ;;  %v787_v19 = vld [vmem:[#allocation6 + $0x1c8] sm:$0xff]  ;;  %v774_v59 = vld [vmem:[#allocation6 + $0x160] sm:$0xff]  ;;  %v776_v46 = vld [vmem:[#allocation6 + $0x170] sm:$0xff] }
 0x1be   :  { %v620_v32 = vmul.f32 0.5, %v616_v28  ;;  %v617_v34 = vadd.f32 1.0, %v1593_v31  ;;  %v623_v40 = vmul.f32 %v619_v35, %v584_v51  ;;  %v933_v51 = vpack.c.bf16 %v753_v54, %v751_v53  ;;  %v793_v28 = vld [vmem:[#allocation6 + $0x1f8] sm:$0xff]  ;;  %v792_v35 = vld [vmem:[#allocation6 + $0x1f0] sm:$0xff]  ;;  %v778_v53 = vld [vmem:[#allocation6 + $0x180] sm:$0xff] }
 0x1bf   :  { %v922_v31 = vpack.c.bf16 %v732_v24, %v730_v23  ;;  %v780_v54 = vld [vmem:[#allocation6 + $0x190] sm:$0xff]  ;;  %v883_v23 = vld [vmem:[#allocation6 + $0x4c8] sm:$0xff]  ;;  %v885_v24 = vld [vmem:[#allocation6 + $0x4d8] sm:$0xff] }
 0x1c0   :  { %v621_v36 = vmul.f32 0.5, %v617_v34  ;;  %v624_v37 = vmul.f32 %v620_v32, %v586_v57  ;;  %v750_v57 = vld [vmem:[#allocation6 + $0xa0] sm:$0xff]  ;;  %v953_v32 = vpack.c.bf16 %v793_v28, %v791_v26  ;;  %v1000_v26 = vpack.c.bf16 %v888_v18, %v886_v15  ;;  %v916_v18 = vld [vmem:[#allocation6 + $0x5d0] sm:$0xff] }
 0x1c1   :  { %v932_v60 = vpack.c.bf16 %v752_v58, %v750_v57  ;;  %v790_v34 = vld [vmem:[#allocation6 + $0x1e0] sm:$0xff]  ;;  %v946_v57 = vpack.c.bf16 %v780_v54, %v778_v53 }
 0x1c2   :  { %v625_v41 = vmul.f32 %v621_v36, %v588_v62  ;;  %v626_v48 = vpack.c.bf16 %v624_v37, %v622_v44  ;;  %v746_v62 = vld [vmem:[#allocation6 + $0x80] sm:$0xff]  ;;  %v789_v36 = vld [vmem:[#allocation6 + $0x1d8] sm:$0xff]  ;;  %v952_v37 = vpack.c.bf16 %v792_v35, %v790_v34  ;;  %v884_v34 = vld [vmem:[#allocation6 + $0x4d0] sm:$0xff] }
 0x1c3   :  { %v930_v2 = vpack.c.bf16 %v748_v63, %v746_v62  ;;  %v951_v38 = vpack.c.bf16 %v789_v36, %v787_v19  ;;  %v944_v62 = vpack.c.bf16 %v776_v46, %v774_v59  ;;  %v879_v35 = vld [vmem:[#allocation6 + $0x4a8] sm:$0xff]  ;;  %v881_v19 = vld [vmem:[#allocation6 + $0x4b8] sm:$0xff]  ;;  %v870_v54 = vld [vmem:[#allocation6 + $0x460] sm:$0xff] }
 0x1c4   :  { %v627_v45 = vpack.c.bf16 %v625_v41, %v623_v40  ;;  %v788_v40 = vld [vmem:[#allocation6 + $0x1d0] sm:$0xff]  ;;  %v783_v41 = vld [vmem:[#allocation6 + $0x1a8] sm:$0xff]  ;;  %v866_v46 = vld [vmem:[#allocation6 + $0x440] sm:$0xff] }
 0x1c5   :  { %v950_v43 = vpack.c.bf16 %v788_v40, %v786_v39  ;;  %v949_v44 = vpack.c.bf16 %v785_v42, %v783_v41  ;;  %v997_v39 = vpack.c.bf16 %v881_v19, %v879_v35  ;;  %v878_v40 = vld [vmem:[#allocation6 + $0x4a0] sm:$0xff]  ;;  %v880_v41 = vld [vmem:[#allocation6 + $0x4b0] sm:$0xff]  ;;  %v875_v42 = vld [vmem:[#allocation6 + $0x488] sm:$0xff] }
 0x1c6   :  { %715 = vmatprep.mubr.bf16.mxu1 %v627_v45  ;;  %v782_v45 = vld [vmem:[#allocation6 + $0x1a0] sm:$0xff] }
 0x1c7   :  { %716 = vmatmul.mubr.bf16.vlgmr.msra.gmra.mxu1 %v626_v48  ;;  %v779_v48 = vld [vmem:[#allocation6 + $0x188] sm:$0xff]  ;;  %v906_v19 = vld [vmem:[#allocation6 + $0x580] sm:$0xff] }
 0x1c8   :  { %1031 = vmatpush1.bf16.msra.mxu1 %v936_v47  ;;  %1062 = vmatprep.mubr.bf16.mxu1 %v1910_v20  ;;  %v744_v20 = vld [vmem:[#allocation6 + $0x70] sm:$0xff] }
 0x1c9   :  { %1032 = vmatprep.subr.bf16.mxu1 %v935_v49  ;;  %v928_v7 = vpack.c.bf16 %v744_v20, %v742_v4  ;;  %v784_v47 = vld [vmem:[#allocation6 + $0x1b0] sm:$0xff]  ;;  %v781_v49 = vld [vmem:[#allocation6 + $0x198] sm:$0xff]  ;;  %v942_v4 = vpack.c.bf16 %v772_v1, %v770_v0  ;;  %v862_v1 = vld [vmem:[#allocation6 + $0x420] sm:$0xff] }
 0x1ca   :  { %v948_v50 = vpack.c.bf16 %v784_v47, %v782_v45  ;;  %v947_v52 = vpack.c.bf16 %v781_v49, %v779_v48  ;;  %v996_v45 = vpack.c.bf16 %v880_v41, %v878_v40  ;;  %v874_v48 = vld [vmem:[#allocation6 + $0x480] sm:$0xff]  ;;  %v876_v49 = vld [vmem:[#allocation6 + $0x490] sm:$0xff] }
 0x1cb   :  { %v902_v41 = vld [vmem:[#allocation6 + $0x560] sm:$0xff] }
 0x1cc   :  { %1033 = vmatpush1.bf16.msra.mxu1 %v934_v55  ;;  %v775_v55 = vld [vmem:[#allocation6 + $0x168] sm:$0xff] }
 0x1cd   :  { %1034 = vmatprep.subr.bf16.mxu1 %v933_v51  ;;  %v777_v51 = vld [vmem:[#allocation6 + $0x178] sm:$0xff] }
 0x1ce   :  { %v945_v58 = vpack.c.bf16 %v777_v51, %v775_v55  ;;  %v872_v55 = vld [vmem:[#allocation6 + $0x470] sm:$0xff]  ;;  %v867_v51 = vld [vmem:[#allocation6 + $0x448] sm:$0xff] }
 0x1d0   :  { %1035 = vmatpush1.bf16.msra.mxu1 %v932_v60  ;;  %v771_v60 = vld [vmem:[#allocation6 + $0x148] sm:$0xff] }
 0x1d1   :  { %1036 = vmatprep.subr.bf16.mxu1 %v931_v61  ;;  %v773_v61 = vld [vmem:[#allocation6 + $0x158] sm:$0xff] }
 0x1d2   :  { %v943_v63 = vpack.c.bf16 %v773_v61, %v771_v60  ;;  %v868_v60 = vld [vmem:[#allocation6 + $0x450] sm:$0xff]  ;;  %v863_v61 = vld [vmem:[#allocation6 + $0x428] sm:$0xff] }
 0x1d4   :  { %1037 = vmatpush1.bf16.msra.mxu1 %v930_v2  ;;  %v767_v2 = vld [vmem:[#allocation6 + $0x128] sm:$0xff] }
 0x1d5   :  { %1038 = vmatprep.subr.bf16.mxu1 %v929_v3  ;;  %v769_v3 = vld [vmem:[#allocation6 + $0x138] sm:$0xff] }
 0x1d6   :  { %v941_v20 = vpack.c.bf16 %v769_v3, %v767_v2  ;;  %v859_v2 = vld [vmem:[#allocation6 + $0x408] sm:$0xff]  ;;  %v861_v3 = vld [vmem:[#allocation6 + $0x418] sm:$0xff] }
 0x1d8   :  { %1039 = vmatpush1.bf16.msra.mxu1 %v928_v7  ;;  %v763_v7 = vld [vmem:[#allocation6 + $0x108] sm:$0xff] }
 0x1d9   :  { %1040 = vmatprep.subr.bf16.mxu1 %v927_v33  ;;  %v765_v33 = vld [vmem:[#allocation6 + $0x118] sm:$0xff] }
 0x1da   :  { %v939_v9 = vpack.c.bf16 %v765_v33, %v763_v7  ;;  %v919_v7 = vld [vmem:[#allocation6 + $0x5e8] sm:$0xff]  ;;  %v921_v33 = vld [vmem:[#allocation6 + $0x5f8] sm:$0xff] }
 0x1dc   :  { %1041 = vmatpush1.bf16.msra.mxu1 %v926_v12  ;;  %v887_v12 = vld [vmem:[#allocation6 + $0x4e8] sm:$0xff] }
 0x1dd   :  { %1042 = vmatprep.subr.bf16.mxu1 %v925_v13  ;;  %v889_v13 = vld [vmem:[#allocation6 + $0x4f8] sm:$0xff] }
 0x1de   :  { %v1001_v16 = vpack.c.bf16 %v889_v13, %v887_v12  ;;  %v915_v12 = vld [vmem:[#allocation6 + $0x5c8] sm:$0xff]  ;;  %v917_v13 = vld [vmem:[#allocation6 + $0x5d8] sm:$0xff] }
 0x1df   :  { %v1015_v15 = vpack.c.bf16 %v917_v13, %v915_v12  ;;  %v1296_v12 = vld [vmem:[#allocation8 + $0xf8] sm:$0xff] }
 0x1e0   :  { %1043 = vmatpush1.bf16.msra.mxu1 %v924_v21  ;;  %v144_v21 = vld [vmem:[#allocation2 + $0x68] sm:$0xff] }
 0x1e1   :  { %1044 = vmatprep.subr.bf16.mxu1 %v923_v22  ;;  %v150_v22 = vld [vmem:[#allocation2 + $0x98] sm:$0xff] }
 0x1e2   :  { %v725_v28 = vpack.c.bf16 %v150_v22, %v144_v21  ;;  %v911_v21 = vld [vmem:[#allocation6 + $0x5a8] sm:$0xff]  ;;  %v913_v22 = vld [vmem:[#allocation6 + $0x5b8] sm:$0xff] }
 0x1e4   :  { %1045 = vmatpush1.bf16.msra.mxu1 %v922_v31  ;;  %v999_v31 = vpack.c.bf16 %v885_v24, %v883_v23  ;;  %v1013_v24 = vpack.c.bf16 %v913_v22, %v911_v21 }
 0x1e5   :  { %1046 = vmatprep.subr.bf16.mxu1 %v953_v32  ;;  %v882_v32 = vld [vmem:[#allocation6 + $0x4c0] sm:$0xff] }
 0x1e6   :  { %v998_v36 = vpack.c.bf16 %v884_v34, %v882_v32  ;;  %v909_v32 = vld [vmem:[#allocation6 + $0x598] sm:$0xff] }
 0x1e8   :  { %1047 = vmatpush2.bf16.msra.mxu1 %v952_v37  ;;  %v143_v37 = vld [vmem:[#allocation2 + $0x60] sm:$0xff] }
 0x1e9   :  { %1048 = vmatprep.subr.bf16.mxu1 %v951_v38  ;;  %v149_v38 = vld [vmem:[#allocation2 + $0x90] sm:$0xff] }
 0x1ec   :  { %1049 = vmatpush2.bf16.msra.mxu1 %v950_v43  ;;  %v877_v43 = vld [vmem:[#allocation6 + $0x498] sm:$0xff] }
 0x1ed   :  { %1050 = vmatprep.subr.bf16.mxu1 %v949_v44  ;;  %v724_v44 = vpack.c.bf16 %v149_v38, %v143_v37  ;;  %v995_v47 = vpack.c.bf16 %v877_v43, %v875_v42  ;;  %v903_v37 = vld [vmem:[#allocation6 + $0x568] sm:$0xff]  ;;  %v905_v38 = vld [vmem:[#allocation6 + $0x578] sm:$0xff]  ;;  %v904_v42 = vld [vmem:[#allocation6 + $0x570] sm:$0xff] }
 0x1ee   :  { %v1009_v40 = vpack.c.bf16 %v905_v38, %v903_v37  ;;  %v899_v43 = vld [vmem:[#allocation6 + $0x548] sm:$0xff] }
 0x1f0   :  { %1051 = vmatpush2.bf16.msra.mxu1 %v948_v50  ;;  %v871_v50 = vld [vmem:[#allocation6 + $0x468] sm:$0xff] }
 0x1f1   :  { %1052 = vmatprep.subr.bf16.mxu1 %v947_v52  ;;  %v994_v52 = vpack.c.bf16 %v876_v49, %v874_v48  ;;  %v898_v48 = vld [vmem:[#allocation6 + $0x540] sm:$0xff]  ;;  %v900_v49 = vld [vmem:[#allocation6 + $0x550] sm:$0xff] }
 0x1f4   :  { %1053 = vmatpush2.bf16.msra.mxu1 %v946_v57  ;;  %v869_v57 = vld [vmem:[#allocation6 + $0x458] sm:$0xff] }
 0x1f5   :  { %1054 = vmatprep.subr.bf16.mxu1 %v945_v58  ;;  %v992_v58 = vpack.c.bf16 %v872_v55, %v870_v54  ;;  %v991_v59 = vpack.c.bf16 %v869_v57, %v867_v51  ;;  %v894_v54 = vld [vmem:[#allocation6 + $0x520] sm:$0xff]  ;;  %v896_v55 = vld [vmem:[#allocation6 + $0x530] sm:$0xff]  ;;  %v891_v51 = vld [vmem:[#allocation6 + $0x508] sm:$0xff] }
 0x1f6   :  { %v893_v57 = vld [vmem:[#allocation6 + $0x518] sm:$0xff] }
 0x1f8   :  { %1055 = vmatpush2.bf16.msra.mxu1 %v944_v62  ;;  %v865_v62 = vld [vmem:[#allocation6 + $0x438] sm:$0xff] }
 0x1f9   :  { %1056 = vmatprep.subr.bf16.mxu1 %v943_v63  ;;  %v990_v63 = vpack.c.bf16 %v868_v60, %v866_v46  ;;  %v989_v0 = vpack.c.bf16 %v865_v62, %v863_v61  ;;  %v890_v46 = vld [vmem:[#allocation6 + $0x500] sm:$0xff]  ;;  %v892_v60 = vld [vmem:[#allocation6 + $0x510] sm:$0xff]  ;;  %v148_v62 = vld [vmem:[#allocation2 + $0x88] sm:$0xff] }
 0x1fa   :  { %v1002_v61 = vpack.c.bf16 %v892_v60, %v890_v46  ;;  %v1285_v60 = vld [vmem:[#allocation8 + $0xa0] sm:$0xff] }
 0x1fc   :  { %1057 = vmatpush2.bf16.msra.mxu1 %v942_v4 }
 0x1fd   :  { %1058 = vmatprep.subr.bf16.mxu1 %v941_v20  ;;  %v987_v20 = vpack.c.bf16 %v861_v3, %v859_v2 }
 0x200   :  { %1059 = vmatpush2.bf16.msra.mxu1 %v940_v8  ;;  %v986_v8 = vpack.c.bf16 %v860_v6, %v858_v5 }
 0x201   :  { %1060 = vmatprep.subr.bf16.mxu1 %v939_v9  ;;  %v1017_v9 = vpack.c.bf16 %v921_v33, %v919_v7 }
 0x204   :  { %1061 = vmatpush2.bf16.msra.mxu1 %v938_v14  ;;  %v1016_v14 = vpack.c.bf16 %v920_v11, %v918_v10  ;;  %v1295_v11 = vld [vmem:[#allocation8 + $0xf0] sm:$0xff] }
 0x205   :  { %1136 = vmatprep.subr.bf16.mxu1 %v1001_v16  ;;  %v914_v16 = vld [vmem:[#allocation6 + $0x5c0] sm:$0xff] }
 0x206   :  { %v1014_v23 = vpack.c.bf16 %v916_v18, %v914_v16  ;;  %v1280_v16 = vld [vmem:[#allocation8 + $0x78] sm:$0xff] }
 0x207   :  { %1063 = vmatmul.mubr.bf16.vlgmr.msra.gmra.mxu1 %v1916_v17  ;;  %v873_v17 = vld [vmem:[#allocation6 + $0x478] sm:$0xff] }
 0x208   :  { %1137 = vmatpush1.bf16.msra.mxu1 %v1000_v26  ;;  %1072 = vmatprep.mubr.bf16.mxu1 %v725_v28  ;;  %v993_v53 = vpack.c.bf16 %v873_v17, %v871_v50  ;;  %v910_v26 = vld [vmem:[#allocation6 + $0x5a0] sm:$0xff]  ;;  %v912_v28 = vld [vmem:[#allocation6 + $0x5b0] sm:$0xff]  ;;  %v895_v50 = vld [vmem:[#allocation6 + $0x528] sm:$0xff] }
 0x209   :  { %1138 = vmatprep.subr.bf16.mxu1 %v999_v31  ;;  %v907_v31 = vld [vmem:[#allocation6 + $0x588] sm:$0xff]  ;;  %v1012_v34 = vpack.c.bf16 %v912_v28, %v910_v26  ;;  %v897_v17 = vld [vmem:[#allocation6 + $0x538] sm:$0xff] }
 0x20a   :  { %v1011_v35 = vpack.c.bf16 %v909_v32, %v907_v31  ;;  %v1277_v31 = vld [vmem:[#allocation8 + $0x60] sm:$0xff]  ;;  %v1278_v32 = vld [vmem:[#allocation8 + $0x68] sm:$0xff] }
 0x20c   :  { %1139 = vmatpush1.bf16.msra.mxu1 %v998_v36  ;;  %v908_v36 = vld [vmem:[#allocation6 + $0x590] sm:$0xff] }
 0x20d   :  { %1140 = vmatprep.subr.bf16.mxu1 %v997_v39  ;;  %v1010_v39 = vpack.c.bf16 %v908_v36, %v906_v19  ;;  %v1291_v19 = vld [vmem:[#allocation8 + $0xd0] sm:$0xff]  ;;  %v1292_v36 = vld [vmem:[#allocation8 + $0xd8] sm:$0xff] }
 0x20e   :  { %v1310_v38 = vpack.c.bf16 %v1292_v36, %v1291_v19 }
 0x20f   :  { %1073 = vmatmul.mubr.bf16.gmra.mxu1 %v724_v44  ;;  %v901_v44 = vld [vmem:[#allocation6 + $0x558] sm:$0xff] }
 0x210   :  { %1141 = vmatpush1.bf16.msra.mxu1 %v996_v45  ;;  %1168 = vmatprep.mubr.bf16.mxu1 %v1922_v29  ;;  %v864_v29 = vld [vmem:[#allocation6 + $0x430] sm:$0xff]  ;;  %v1008_v45 = vpack.c.bf16 %v904_v42, %v902_v41 }
 0x211   :  { %1142 = vmatprep.subr.bf16.mxu1 %v995_v47  ;;  %v988_v4 = vpack.c.bf16 %v864_v29, %v862_v1  ;;  %v1007_v47 = vpack.c.bf16 %v901_v44, %v899_v43  ;;  %v147_v1 = vld [vmem:[#allocation2 + $0x80] sm:$0xff]  ;;  %v153_v29 = vld [vmem:[#allocation2 + $0xb0] sm:$0xff]  ;;  %v1290_v44 = vld [vmem:[#allocation8 + $0xc8] sm:$0xff] }
 0x212   :  { %v728_v2 = vpack.c.bf16 %v153_v29, %v147_v1  ;;  %v1289_v43 = vld [vmem:[#allocation8 + $0xc0] sm:$0xff] }
 0x214   :  { %1143 = vmatpush1.bf16.msra.mxu1 %v994_v52  ;;  %v1006_v52 = vpack.c.bf16 %v900_v49, %v898_v48  ;;  %v1274_v48 = vld [vmem:[#allocation8 + $0x48] sm:$0xff] }
 0x215   :  { %1144 = vmatprep.subr.bf16.mxu1 %v993_v53  ;;  %v1005_v53 = vpack.c.bf16 %v897_v17, %v895_v50 }
 0x218   :  { %1145 = vmatpush1.bf16.msra.mxu1 %v992_v58  ;;  %v1004_v58 = vpack.c.bf16 %v896_v55, %v894_v54  ;;  %v1271_v55 = vld [vmem:[#allocation8 + $0x30] sm:$0xff] }
 0x219   :  { %1146 = vmatprep.subr.bf16.mxu1 %v991_v59  ;;  %v1003_v59 = vpack.c.bf16 %v893_v57, %v891_v51  ;;  %v1272_v51 = vld [vmem:[#allocation8 + $0x38] sm:$0xff] }
 0x21c   :  { %1147 = vmatpush1.bf16.msra.mxu1 %v990_v63  ;;  %v154_v63 = vld [vmem:[#allocation2 + $0xb8] sm:$0xff] }
 0x21d   :  { %1148 = vmatprep.subr.bf16.mxu1 %v989_v0  ;;  %v729_v0 = vpack.c.bf16 %v154_v63, %v148_v62  ;;  %v1269_v63 = vld [vmem:[#allocation8 + $0x20] sm:$0xff] }
 0x220   :  { %1149 = vmatpush1.bf16.msra.mxu1 %v988_v4  ;;  %v1369_v4 = vld [vmem:[#allocation14] sm:$0x1] }
 0x221   :  { %1150 = vmatprep.subr.bf16.mxu1 %v987_v20  ;;  %v1515_v20 = vld [vmem:[#allocation12] ss:$0 sm:$0xff]  ;;  %v1947_v7 = vrot.slane %v1369_v4, %v1933_v27 }
 0x224   :  { %1151 = vmatpush1.bf16.msra.mxu1 %v986_v8 }
 0x225   :  { %1152 = vmatprep.subr.bf16.mxu1 %v1017_v9 }
 0x228   :  { %1153 = vmatpush2.bf16.msra.mxu1 %v1016_v14  ;;  %v1312_v14 = vpack.c.bf16 %v1296_v12, %v1295_v11  ;;  %v1265_v11 = vld [vmem:[#allocation8] sm:$0xff]  ;;  %v1266_v12 = vld [vmem:[#allocation8 + $0x8] sm:$0xff] }
 0x229   :  { %1154 = vmatprep.subr.bf16.mxu1 %v1015_v15  ;;  %v1279_v15 = vld [vmem:[#allocation8 + $0x70] sm:$0xff] }
 0x22a   :  { %v1304_v18 = vpack.c.bf16 %v1280_v16, %v1279_v15  ;;  %1539 = vmatprep.subr.bf16.mxu0 %v1312_v14  ;;  %v1297_v14 = vpack.c.bf16 %v1266_v12, %v1265_v11 }
 0x22c   :  { %1155 = vmatpush2.bf16.msra.mxu1 %v1014_v23  ;;  %1540 = vmatpush3.bf16.msra.mxu0 %v1304_v18  ;;  %v1293_v23 = vld [vmem:[#allocation8 + $0xe0] sm:$0xff] }
 0x22d   :  { %1156 = vmatprep.subr.bf16.mxu1 %v1013_v24  ;;  %v1294_v24 = vld [vmem:[#allocation8 + $0xe8] sm:$0xff] }
 0x22e   :  { %v1311_v28 = vpack.c.bf16 %v1294_v24, %v1293_v23 }
 0x230   :  { %1157 = vmatpush2.bf16.msra.mxu1 %v1012_v34  ;;  %v1303_v34 = vpack.c.bf16 %v1278_v32, %v1277_v31  ;;  %1541 = vmatprep.subr.bf16.mxu0 %v1311_v28 }
 0x231   :  { %1158 = vmatprep.subr.bf16.mxu1 %v1011_v35 }
 0x232   :  { %1542 = vmatpush3.bf16.msra.mxu0 %v1303_v34 }
 0x233   :  { %1543 = vmatprep.subr.bf16.mxu0 %v1310_v38 }
 0x234   :  { %1159 = vmatpush2.bf16.msra.mxu1 %v1010_v39  ;;  %v1275_v39 = vld [vmem:[#allocation8 + $0x50] sm:$0xff] }
 0x235   :  { %1160 = vmatprep.subr.bf16.mxu1 %v1009_v40  ;;  %v1276_v40 = vld [vmem:[#allocation8 + $0x58] sm:$0xff] }
 0x236   :  { %v1302_v41 = vpack.c.bf16 %v1276_v40, %v1275_v39 }
 0x238   :  { %1161 = vmatpush2.bf16.msra.mxu1 %v1008_v45  ;;  %1544 = vmatpush3.bf16.msra.mxu0 %v1302_v41  ;;  %v1309_v45 = vpack.c.bf16 %v1290_v44, %v1289_v43 }
 0x239   :  { %1162 = vmatprep.subr.bf16.mxu1 %v1007_v47  ;;  %v1273_v47 = vld [vmem:[#allocation8 + $0x40] sm:$0xff] }
 0x23a   :  { %v1301_v50 = vpack.c.bf16 %v1274_v48, %v1273_v47  ;;  %1545 = vmatprep.subr.bf16.mxu0 %v1309_v45 }
 0x23c   :  { %1163 = vmatpush2.bf16.msra.mxu1 %v1006_v52  ;;  %1546 = vmatpush3.bf16.msra.mxu0 %v1301_v50  ;;  %v1287_v52 = vld [vmem:[#allocation8 + $0xb0] sm:$0xff] }
 0x23d   :  { %1164 = vmatprep.subr.bf16.mxu1 %v1005_v53  ;;  %v1288_v53 = vld [vmem:[#allocation8 + $0xb8] sm:$0xff] }
 0x23e   :  { %v1308_v54 = vpack.c.bf16 %v1288_v53, %v1287_v52 }
 0x240   :  { %1165 = vmatpush2.bf16.msra.mxu1 %v1004_v58  ;;  %v1480_v58 = vmul.f32 0.9, %v1369_v4  ;;  %1547 = vmatprep.subr.bf16.mxu0 %v1308_v54 }
 0x241   :  { %1166 = vmatprep.subr.bf16.mxu1 %v1003_v59  ;;  %v1300_v59 = vpack.c.bf16 %v1272_v51, %v1271_v55 }
 0x243   :  { %1548 = vmatpush3.bf16.msra.mxu0 %v1300_v59 }
 0x244   :  { %1167 = vmatpush2.bf16.msra.mxu1 %v1002_v61  ;;  %v1286_v61 = vld [vmem:[#allocation8 + $0xa8] sm:$0xff] }
 0x245   :  { %v1307_v62 = vpack.c.bf16 %v1286_v61, %v1285_v60 }
 0x247   :  { %1169 = vmatmul.mubr.bf16.vlgmr.msra.gmra.mxu1 %v1925_v56  ;;  %1549 = vmatprep.subr.bf16.mxu0 %v1307_v62 }
 0x248   :  { %1178 = vmatprep.mubr.bf16.mxu1 %v729_v0  ;;  %v1270_v0 = vld [vmem:[#allocation8 + $0x28] sm:$0xff] }
 0x249   :  { %v1299_v29 = vpack.c.bf16 %v1270_v0, %v1269_v63 }
 0x24b   :  { %1550 = vmatpush3.bf16.msra.mxu0 %v1299_v29 }
 0x24f   :  { %1179 = vmatmul.mubr.bf16.gmra.mxu1 %v728_v2  ;;  %v1283_v2 = vld [vmem:[#allocation8 + $0x90] sm:$0xff] }
 0x287   :  { %v1533_v3 = vpop.f32.mrf.mxu1 }
 0x289   :  { %v1534_v5 = vpop.f32.mrf.mxu1 }
 0x28a   :  { %v1535_v6 = vadd.f32 %v1534_v5, %v1533_v3  ;;  %v1284_v3 = vld [vmem:[#allocation8 + $0x98] sm:$0xff]  ;;  %v1267_v5 = vld [vmem:[#allocation8 + $0x10] sm:$0xff] }
 0x28b   :  { %v1536_v33 = vpop.f32.mrf.mxu1 }
 0x28c   :  { %v1949_v8 = vadd.f32 %v1535_v6, %v1515_v20  ;;  %v1268_v6 = vld [vmem:[#allocation8 + $0x18] sm:$0xff] }
 0x28d   :  { %v1537_v9 = vpop.f32.mrf.mxu1  ;;  %v1298_v4 = vpack.c.bf16 %v1268_v6, %v1267_v5 }
 0x28e   :  { %v1538_v10 = vadd.f32 %v1537_v9, %v1536_v33  ;;  %v1376_v56 = vsub.f32 %v1949_v8, %v1947_v7  ;;  %v1281_v33 = vld [vmem:[#allocation8 + $0x80] sm:$0xff]  ;;  %v1282_v9 = vld [vmem:[#allocation8 + $0x88] sm:$0xff] }
 0x290   :  { %v1953_v13 = vadd.f32 %v1538_v10, %v1515_v20  ;;  %v1306_v20 = vpack.c.bf16 %v1284_v3, %v1283_v2  ;;  %v1305_v10 = vpack.c.bf16 %v1282_v9, %v1281_v33 }
 0x292   :  { %v1472_v21 = vadd.f32 %v1953_v13, %v1949_v8  ;;  %v1377_v22 = vsub.f32 %v1953_v13, %v1947_v7  ;;  %1551 = vmatprep.subr.bf16.mxu0 %v1306_v20 }
 0x293   :  { %1552 = vmatpush3.bf16.msra.mxu0 %v1298_v4 }
 0x294   :  { %v1473_v26 = vrot.slane %v1472_v21, 4  ;;  %1553 = vmatprep.subr.bf16.mxu0 %v1305_v10 }
 0x296   :  { %v1474_v35 = vadd.f32 %v1473_v26, %v1472_v21  ;;  %v1117_v21 = vpop.f32.mrf.mxu0  ;;  %v1018_v26 = vld [vmem:[%s2024_s2] sm:$0x3] }
 0x297   :  { %1554 = vmatpush3.bf16.msra.mxu0 %v1297_v14  ;;  %v1023_v32 = vrot.slane %v1018_v26, %v1933_v27 }
 0x298   :  { %v1475_v37 = vrot.slane %v1474_v35, 2  ;;  %v1119_v28 = vpop.f32.mrf.mxu0 }
 0x29a   :  { %v1476_v42 = vadd.f32 %v1475_v37, %v1474_v35  ;;  %v1121_v34 = vpop.f32.mrf.mxu0  ;;  %v1027_v35 = vrot.slane %v1018_v26, %v457_v30 }
 0x29c   :  { %v1477_v49 = vrot.slane %v1476_v42, 1  ;;  %v1123_v37 = vpop.f32.mrf.mxu0 }
 0x29e   :  { %v1478_v17 = vadd.f32 %v1477_v49, %v1476_v42  ;;  %v1127_v39 = vpop.f32.mrf.mxu0 }
 0x2a0   :  { %v1479_v57 = vmul.f32 0.0625, %v1478_v17  ;;  %v1129_v48 = vpop.f32.mrf.mxu0 }
 0x2a2   :  { %v1481_v46 = vmul.f32 0.1, %v1479_v57  ;;  %v1131_v57 = vpop.f32.mrf.mxu0 }
 0x2a4   :  { %v1482_v1 = vadd.f32 %v1481_v46, %v1480_v58  ;;  %v1133_v6 = vpop.f32.mrf.mxu0 }
 0x2a6   :  { %1483 = vst [vmem:[#allocation16] sm:$0x1] %v1482_v1 }
 0x2c7   :  { %v1064_v15 = vpop.f32.mrf.mxu1 }
 0x2c8   :  { %v1065_v36 = vadd.f32 %v1064_v15, %v1023_v32 }
 0x2c9   :  { %v1066_v16 = vpop.f32.mrf.mxu1 }
 0x2ca   :  { %v1067_v38 = vadd.f32 %v1066_v16, %v1027_v35  ;;  %v1118_v41 = vadd.f32 %v1117_v21, %v1065_v36 }
 0x2cb   :  { %v1068_v18 = vpop.f32.mrf.mxu1 }
 0x2cc   :  { %v1069_v42 = vadd.f32 %v1068_v18, %v1023_v32  ;;  %v1120_v44 = vadd.f32 %v1119_v28, %v1067_v38 }
 0x2cd   :  { %v1070_v23 = vpop.f32.mrf.mxu1 }
 0x2ce   :  { %v1071_v45 = vadd.f32 %v1070_v23, %v1027_v35  ;;  %v1122_v27 = vadd.f32 %v1121_v34, %v1069_v42 }
 0x2cf   :  { %v1074_v24 = vpop.f32.mrf.mxu1 }
 0x2d0   :  { %v1075_v50 = vadd.f32 %v1074_v24, %v1023_v32  ;;  %v1124_v52 = vadd.f32 %v1123_v37, %v1071_v45 }
 0x2d1   :  { %v1076_v31 = vpop.f32.mrf.mxu1 }
 0x2d2   :  { %v1077_v51 = vadd.f32 %v1076_v31, %v1027_v35  ;;  %v1128_v62 = vadd.f32 %v1127_v39, %v1075_v50 }
 0x2d3   :  { %v1078_v19 = vpop.f32.mrf.mxu1 }
 0x2d4   :  { %v1079_v63 = vadd.f32 %v1078_v19, %v1023_v32  ;;  %v1130_v5 = vadd.f32 %v1129_v48, %v1077_v51 }
 0x2d5   :  { %v1080_v40 = vpop.f32.mrf.mxu1 }
 0x2d6   :  { %v1081_v0 = vadd.f32 %v1080_v40, %v1027_v35  ;;  %v1132_v14 = vadd.f32 %v1131_v57, %v1079_v63 }
 0x2d8   :  { %v1134_v21 = vadd.f32 %v1133_v6, %v1081_v0 }
 0x307   :  { %v1170_v43 = vpop.f32.mrf.mxu1 }
 0x308   :  { %v1965_v47 = vadd.f32 %v1170_v43, %v1118_v41 }
 0x309   :  { %v1172_v49 = vpop.f32.mrf.mxu1 }
 0x30a   :  { %v1189_v25 = vmul.f32 %v1965_v47, %v1965_v47  ;;  %v1969_v30 = vadd.f32 %v1172_v49, %v1120_v44 }
 0x30b   :  { %v1174_v17 = vpop.f32.mrf.mxu1 }
 0x30c   :  { %v1197_v53 = vmul.f32 %v1189_v25, %v1965_v47  ;;  %v1190_v54 = vmul.f32 %v1969_v30, %v1969_v30  ;;  %v1974_v55 = vadd.f32 %v1174_v17, %v1122_v27 }
 0x30d   :  { %v1176_v58 = vpop.f32.mrf.mxu1 }
 0x30e   :  { %v1205_v59 = vmul.f32 0.044715, %v1197_v53  ;;  %v1198_v46 = vmul.f32 %v1190_v54, %v1969_v30  ;;  %v1191_v60 = vmul.f32 %v1974_v55, %v1974_v55  ;;  %v1979_v61 = vadd.f32 %v1176_v58, %v1124_v52 }
 0x30f   :  { %v1180_v1 = vpop.f32.mrf.mxu1 }
 0x310   :  { %v1213_v29 = vadd.f32 %v1205_v59, %v1965_v47  ;;  %v1206_v2 = vmul.f32 0.044715, %v1198_v46  ;;  %v1199_v3 = vmul.f32 %v1191_v60, %v1974_v55  ;;  %v1192_v20 = vmul.f32 %v1979_v61, %v1979_v61 }
 0x311   :  { %v1985_v4 = vadd.f32 %v1180_v1, %v1128_v62  ;;  %v1182_v33 = vpop.f32.mrf.mxu1 }
 0x312   :  { %v1221_v9 = vmul.f32 0.7978846, %v1213_v29  ;;  %v1214_v10 = vadd.f32 %v1206_v2, %v1969_v30  ;;  %v1207_v11 = vmul.f32 0.044715, %v1199_v3  ;;  %v1200_v12 = vmul.f32 %v1192_v20, %v1979_v61 }
 0x313   :  { %v1193_v15 = vmul.f32 %v1985_v4, %v1985_v4  ;;  %v1991_v16 = vadd.f32 %v1182_v33, %v1130_v5  ;;  %v1184_v18 = vpop.f32.mrf.mxu1 }
 0x314   :  { %v1222_v23 = vmul.f32 0.7978846, %v1214_v10  ;;  %v1215_v24 = vadd.f32 %v1207_v11, %v1974_v55  ;;  %v1208_v26 = vmul.f32 0.044715, %v1200_v12  ;;  %1594 = vtanh.f32 %v1221_v9 }
 0x315   :  { %v1201_v28 = vmul.f32 %v1193_v15, %v1985_v4  ;;  %v1194_v31 = vmul.f32 %v1991_v16, %v1991_v16  ;;  %v1185_v32 = vadd.f32 %v1184_v18, %v1132_v14  ;;  %v1186_v34 = vpop.f32.mrf.mxu1 }
 0x316   :  { %1596 = vtanh.f32 %v1222_v23  ;;  %v1223_v35 = vmul.f32 0.7978846, %v1215_v24  ;;  %v1216_v19 = vadd.f32 %v1208_v26, %v1979_v61  ;;  %v1187_v36 = vadd.f32 %v1186_v34, %v1134_v21 }
 0x317   :  { %v1209_v37 = vmul.f32 0.044715, %v1201_v28  ;;  %v1202_v38 = vmul.f32 %v1194_v31, %v1991_v16  ;;  %v1195_v39 = vmul.f32 %v1185_v32, %v1185_v32 }
 0x318   :  { %1598 = vtanh.f32 %v1223_v35  ;;  %v1224_v40 = vmul.f32 0.7978846, %v1216_v19  ;;  %v1196_v41 = vmul.f32 %v1187_v36, %v1187_v36 }
 0x319   :  { %v1217_v42 = vadd.f32 %v1209_v37, %v1985_v4  ;;  %v1210_v43 = vmul.f32 0.044715, %v1202_v38  ;;  %v1203_v44 = vmul.f32 %v1195_v39, %v1185_v32  ;;  %v1516_v38 = vld [vmem:[%s2026_s4] ss:$0 sm:$0xff]  ;;  %s1827_s4 = smov [#allocation16]  }
 0x31a   :  { %1600 = vtanh.f32 %v1224_v40  ;;  %v1204_v45 = vmul.f32 %v1196_v41, %v1187_v36  ;;  %s1498_s5 = sshll.u32 %s1827_s4, 4  ;;  %s1499_s5 = int_to_ptr.vmem [resolvable:$true] %s1498_s5 }
 0x31b   :  { %v1225_v48 = vmul.f32 0.7978846, %v1217_v42  ;;  %v1218_v49 = vadd.f32 %v1210_v43, %v1991_v16  ;;  %v1211_v27 = vmul.f32 0.044715, %v1203_v44  ;;  %s1774_s18 = scalar_lea.vmem %s1499_s5, 16  ;;  %s1778_s19 = scalar_lea.vmem %s1499_s5, 32 }
 0x31c   :  { %v1212_v25 = vmul.f32 0.044715, %v1204_v45  ;;  %p1775_p7 = scmp.ne.s32.totalorder %s1499_s5, %s1774_s18  ;;  %p1779_p8 = scmp.lt.s32.totalorder %s1499_s5, %s1499_s5 }
 0x31d   :  { %1602 = vtanh.f32 %v1225_v48  ;;  %v1226_v50 = vmul.f32 0.7978846, %v1218_v49  ;;  %v1219_v17 = vadd.f32 %v1211_v27, %v1185_v32  ;;  %p1780_p9 = scmp.lt.s32.totalorder %s1778_s19, %s1774_s18 }
 0x31e   :  { %v1220_v52 = vadd.f32 %v1212_v25, %v1187_v36 }
 0x31f   :  { %1604 = vtanh.f32 %v1226_v50  ;;  %v1227_v53 = vmul.f32 0.7978846, %v1219_v17  ;;  %v1378_v17 = vmul.f32 25.0, %v1376_v56  ;;  %p1781_p10 = por %p1780_p9, %p1779_p8 }
 0x320   :  { %v1228_v54 = vmul.f32 0.7978846, %v1220_v52 }
 0x321   :  { %1606 = vtanh.f32 %v1227_v53  ;;  %v1595_v51 = vpop.eup %1594  ;;  %p1782_p11 = pnand %p1781_p10, %p1775_p7 }
 0x322   :  { %1608 = vtanh.f32 %v1228_v54  ;;  %v1237_v46 = vadd.f32 1.0, %v1595_v51  ;;  %v1379_v54 = vmul.f32 25.0, %v1377_v22 }
 0x323   :  { %v1597_v57 = vpop.eup %1596 }
 0x324   :  { %v1238_v58 = vadd.f32 1.0, %v1597_v57  ;;  %v1245_v29 = vmul.f32 0.5, %v1237_v46 }
 0x325   :  { %v1599_v59 = vpop.eup %1598 }
 0x326   :  { %v1239_v60 = vadd.f32 1.0, %v1599_v59  ;;  %v1246_v1 = vmul.f32 0.5, %v1238_v58  ;;  %v1253_v9 = vmul.f32 %v1245_v29, %v1965_v47 }
 0x327   :  { %v1601_v62 = vpop.eup %1600 }
 0x328   :  { %v1247_v63 = vmul.f32 0.5, %v1239_v60  ;;  %v1240_v0 = vadd.f32 1.0, %v1601_v62  ;;  %v1254_v6 = vmul.f32 %v1246_v1, %v1969_v30 }
 0x32a   :  { %v1603_v2 = vpop.eup %1602  ;;  %v1248_v3 = vmul.f32 0.5, %v1240_v0  ;;  %v1255_v20 = vmul.f32 %v1247_v63, %v1974_v55 }
 0x32b   :  { %v1241_v11 = vadd.f32 1.0, %v1603_v2 }
 0x32c   :  { %v1605_v5 = vpop.eup %1604  ;;  %v1256_v33 = vmul.f32 %v1248_v3, %v1979_v61  ;;  %v1261_v18 = vpack.c.bf16 %v1255_v20, %v1253_v9 }
 0x32d   :  { %v1242_v10 = vadd.f32 1.0, %v1605_v5  ;;  %v1249_v26 = vmul.f32 0.5, %v1241_v11 }
 0x32e   :  { %v1607_v12 = vpop.eup %1606  ;;  %v1262_v14 = vpack.c.bf16 %v1256_v33, %v1254_v6 }
 0x32f   :  { %v1609_v15 = vpop.eup %1608  ;;  %v1243_v21 = vadd.f32 1.0, %v1607_v12  ;;  %v1250_v24 = vmul.f32 0.5, %v1242_v10  ;;  %v1257_v47 = vmul.f32 %v1249_v26, %v1985_v4 }
 0x330   :  { %1352 = vmatprep.mubr.bf16.mxu0 %v1262_v14  ;;  %v1244_v23 = vadd.f32 1.0, %v1609_v15 }
 0x331   :  { %1353 = vmatmul.mubr.bf16.vlgmr.msra.gmra.mxu0 %v1261_v18  ;;  %v1251_v55 = vmul.f32 0.5, %v1243_v21  ;;  %v1258_v30 = vmul.f32 %v1250_v24, %v1991_v16 }
 0x332   :  { %v1252_v28 = vmul.f32 0.5, %v1244_v23 }
 0x333   :  { %v1259_v31 = vmul.f32 %v1251_v55, %v1185_v32 }
 0x334   :  { %v1260_v61 = vmul.f32 %v1252_v28, %v1187_v36 }
 0x335   :  { %v1263_v35 = vpack.c.bf16 %v1259_v31, %v1257_v47 }
 0x336   :  { %v1264_v34 = vpack.c.bf16 %v1260_v61, %v1258_v30 }
 0x338   :  { %1360 = vmatprep.mubr.bf16.mxu0 %v1264_v34 }
 0x339   :  { %1361 = vmatmul.mubr.bf16.gmra.mxu0 %v1263_v35 }
 0x3f1   :  { %v1555_v19 = vpop.f32.mrf.mxu0 }
 0x3f3   :  { %v1556_v37 = vpop.f32.mrf.mxu0 }
 0x3f4   :  { %v1557_v39 = vadd.f32 %v1556_v37, %v1555_v19 }
 0x3f5   :  { %v1558_v40 = vpop.f32.mrf.mxu0 }
 0x3f6   :  { %v1355_v41 = vadd.f32 %v1557_v39, %v1516_v38 }
 0x3f7   :  { %v1559_v42 = vpop.f32.mrf.mxu0 }
 0x3f8   :  { %v1560_v32 = vadd.f32 %v1559_v42, %v1558_v40  ;;  %v1398_v43 = vmul.f32 10.0, %v1355_v41 }
 0x3f9   :  { %v1561_v16 = vpop.f32.mrf.mxu0 }
 0x3fa   :  { %1402 = vmax.xlane.f32.xlu0 %v1398_v43  ;;  %v1358_v36 = vadd.f32 %v1560_v32, %v1516_v38 }
 0x3fb   :  { %v1562_v4 = vpop.f32.mrf.mxu0 }
 0x3fc   :  { %v1563_v44 = vadd.f32 %v1562_v4, %v1561_v16  ;;  %v1399_v45 = vmul.f32 10.0, %v1358_v36 }
 0x3fd   :  { %v1564_v48 = vpop.f32.mrf.mxu0 }
 0x3fe   :  { %1404 = vmax.xlane.f32.xlu0 %v1399_v45  ;;  %v1363_v49 = vadd.f32 %v1563_v44, %v1516_v38 }
 0x3ff   :  { %v1565_v27 = vpop.f32.mrf.mxu0 }
 0x400   :  { %v1566_v25 = vadd.f32 %v1565_v27, %v1564_v48  ;;  %v1400_v50 = vmul.f32 10.0, %v1363_v49 }
 0x402   :  { %1406 = vmax.xlane.f32.xlu1 %v1400_v50  ;;  %1380 = vmax.xlane.f32.xlu0 %v1378_v17  ;;  %v1366_v52 = vadd.f32 %v1566_v25, %v1516_v38 }
 0x404   :  { %v1401_v53 = vmul.f32 10.0, %v1366_v52 }
 0x406   :  { %1408 = vmax.xlane.f32.xlu1 %v1401_v53 }
 0x40a   :  { %1382 = vmax.xlane.f32.xlu1 %v1379_v54 }
 0x483   :  { %v1403_v51 = vpop.xlane.xlu0 %1402 }
 0x484   :  { %v1410_v57 = vsub.f32 %v1398_v43, %v1403_v51 }
 0x486   :  { %v1414_v58 = vmul.f32 1.442695, %v1410_v57 }
 0x487   :  { %v1405_v59 = vpop.xlane.xlu0 %1404 }
 0x488   :  { %1610 = vpow2.f32 %v1414_v58  ;;  %v1411_v46 = vsub.f32 %v1399_v45, %v1405_v59 }
 0x48a   :  { %v1416_v60 = vmul.f32 1.442695, %v1411_v46 }
 0x48b   :  { %v1407_v62 = vpop.xlane.xlu1 %1406  ;;  %v1381_v8 = vpop.xlane.xlu0 %1380 }
 0x48c   :  { %1612 = vpow2.f32 %v1416_v60  ;;  %v1412_v56 = vsub.f32 %v1400_v50, %v1407_v62  ;;  %v1384_v63 = vsub.f32 %v1378_v17, %v1381_v8 }
 0x48e   :  { %v1418_v0 = vmul.f32 1.442695, %v1412_v56  ;;  %v1386_v1 = vmul.f32 1.442695, %v1384_v63 }
 0x48f   :  { %v1409_v29 = vpop.xlane.xlu1 %1408 }
 0x490   :  { %1614 = vpow2.f32 %v1418_v0  ;;  %v1413_v2 = vsub.f32 %v1401_v53, %v1409_v29 }
 0x491   :  { %1616 = vpow2.f32 %v1386_v1 }
 0x492   :  { %v1420_v7 = vmul.f32 1.442695, %v1413_v2 }
 0x493   :  { %v1383_v13 = vpop.xlane.xlu1 %1382 }
 0x494   :  { %1618 = vpow2.f32 %v1420_v7  ;;  %v1385_v22 = vsub.f32 %v1379_v54, %v1383_v13 }
 0x495   :  { %v1611_v3 = vpop.eup %1610 }
 0x496   :  { %v1388_v20 = vmul.f32 1.442695, %v1385_v22  ;;  %1422 = vadd.xlane.f32.xlu0 %v1611_v3 }
 0x498   :  { %1620 = vpow2.f32 %v1388_v20 }
 0x499   :  { %v1613_v5 = vpop.eup %1612 }
 0x49a   :  { %1424 = vadd.xlane.f32.xlu1 %v1613_v5 }
 0x49d   :  { %v1615_v6 = vpop.eup %1614 }
 0x49e   :  { %1426 = vadd.xlane.f32.xlu0 %v1615_v6  ;;  %v1617_v33 = vpop.eup %1616 }
 0x4a1   :  { %v1619_v9 = vpop.eup %1618 }
 0x4a2   :  { %1428 = vadd.xlane.f32.xlu1 %v1619_v9  ;;  %1390 = vadd.xlane.f32.xlu0 %v1617_v33 }
 0x4a5   :  { %v1621_v10 = vpop.eup %1620 }
 0x4a6   :  { %1392 = vadd.xlane.f32.xlu1 %v1621_v10 }
 0x51f   :  { %v1423_v11 = vpop.xlane.xlu0 %1422 }
 0x520   :  { %1622 = vlog2.f32 %v1423_v11 }
 0x523   :  { %v1425_v12 = vpop.xlane.xlu1 %1424 }
 0x524   :  { %1624 = vlog2.f32 %v1425_v12 }
 0x527   :  { %v1427_v14 = vpop.xlane.xlu0 %1426 }
 0x528   :  { %1626 = vlog2.f32 %v1427_v14 }
 0x52b   :  { %v1429_v15 = vpop.xlane.xlu1 %1428  ;;  %v1391_v18 = vpop.xlane.xlu0 %1390 }
 0x52c   :  { %1628 = vlog2.f32 %v1429_v15 }
 0x52d   :  { %1630 = vrcp.f32 %v1391_v18  ;;  %v1623_v23 = vpop.eup %1622 }
 0x52e   :  { %v1431_v55 = vmul.f32 0.6931472, %v1623_v23 }
 0x52f   :  { %v1393_v21 = vpop.xlane.xlu1 %1392 }
 0x530   :  { %1632 = vrcp.f32 %v1393_v21  ;;  %v1438_v61 = vsub.f32 %v1410_v57, %v1431_v55 }
 0x531   :  { %v1625_v24 = vpop.eup %1624 }
 0x532   :  { %v1433_v26 = vmul.f32 0.6931472, %v1625_v24 }
 0x534   :  { %v1439_v30 = vsub.f32 %v1411_v46, %v1433_v26 }
 0x535   :  { %v1627_v28 = vpop.eup %1626 }
 0x536   :  { %v1435_v31 = vmul.f32 0.6931472, %v1627_v28  ;;  %v1442_v19 = vadd.f32 %v1439_v30, %v1438_v61 }
 0x538   :  { %v1440_v47 = vsub.f32 %v1412_v56, %v1435_v31 }
 0x539   :  { %v1629_v34 = vpop.eup %1628 }
 0x53a   :  { %v1437_v35 = vmul.f32 0.6931472, %v1629_v34  ;;  %v1631_v37 = vpop.eup %1630  ;;  %v1443_v39 = vadd.f32 %v1442_v19, %v1440_v47 }
 0x53b   :  { %v1396_v43 = vmul.f32 %v1631_v37, %v1617_v33 }
 0x53c   :  { %v1441_v38 = vsub.f32 %v1413_v2, %v1437_v35 }
 0x53d   :  { %v1633_v40 = vpop.eup %1632 }
 0x53e   :  { %v1444_v41 = vadd.f32 %v1443_v39, %v1441_v38  ;;  %v1397_v42 = vmul.f32 %v1633_v40, %v1621_v10 }
 0x540   :  { %v1457_v32 = vsub.f32 %v1439_v30, %v1444_v41  ;;  %v1445_v16 = vsub.f32 %v1438_v61, %v1444_v41 }
 0x542   :  { %v1458_v36 = vmul.f32 %v1457_v32, %v1397_v42  ;;  %v1446_v4 = vmul.f32 %v1445_v16, %v1396_v43 }
 0x544   :  { %1459 = vadd.xlane.f32.xlu1 %v1458_v36  ;;  %1447 = vadd.xlane.f32.xlu0 %v1446_v4 }
 0x545   :  { %1785 = shalt.err (!%p1782_p11)
}
 0x546   :  { %1501 = dma.vmem_to_hbm [thread:$0]  %s1499_s5, 16, %s2033_s11, [#allocation4]  }
 0x547   :  { %s1828_s24 = smov [#allocation15]  }
 0x5cd   :  { %v1460_v44 = vpop.xlane.xlu1 %1459  ;;  %v1448_v45 = vpop.xlane.xlu0 %1447 }
 0x5ce   :  { %v1461_v48 = vrot.slane %v1460_v44, 4  ;;  %v1449_v49 = vrot.slane %v1448_v45, 4 }
 0x5d0   :  { %v1462_v27 = vadd.f32 %v1461_v48, %v1460_v44  ;;  %v1450_v25 = vadd.f32 %v1449_v49, %v1448_v45 }
 0x5d2   :  { %v1463_v50 = vrot.slane %v1462_v27, 2  ;;  %v1451_v17 = vrot.slane %v1450_v25, 2 }
 0x5d4   :  { %v1464_v52 = vadd.f32 %v1463_v50, %v1462_v27  ;;  %v1452_v53 = vadd.f32 %v1451_v17, %v1450_v25 }
 0x5d6   :  { %v1453_v54 = vrot.slane %v1452_v53, 1  ;;  %v1465_v51 = vrot.slane %v1464_v52, 1 }
 0x5d8   :  { %v1454_v57 = vadd.f32 %v1453_v54, %v1452_v53  ;;  %v1466_v58 = vadd.f32 %v1465_v51, %v1464_v52 }
 0x5da   :  { %1567 = vpush %v1454_v57 }
 0x5db   :  { %1569 = vpush %v1466_v58 }
 0x60b   :  { %s1568_s22 = spop %1567 }
 0x60c   :  { %s1570_s8 = spop %1569 }
 0x60d   :  { %s1468_s23 = sadd.f32 %s1570_s8, %s1568_s22 }
 0x60f   :  { %s1469_s11 = smul.f32 0.020833334, %s1468_s23 }
 0x611   :  { %1471 = sst [smem:[#allocation15]] %s1469_s11 }
 0x612   :  { %1491 = dma.smem_to_hbm %s1828_s24, 16, %s2032_s10, [#allocation5]  }
 0x613   :  { %1810 = dma.done.wait [#allocation5], 16  }
 0x614   :  { %1811 = vsyncadd [#allocation5], 4294967280 }
 0x615   :  { %1812 = dma.done.wait [#allocation4], 16  }
 0x616   :  { %1813 = vsyncadd [#allocation4], 4294967280 }
 0x617   :  { %1508 = sfence }
 0x618   :  { %1509 = vsyncpa [#allocation3], 1 }
 0x619   :  { %1510 = vsyncpa [#allocation7], 1 }
 0x61a   :  { %1511 = vsyncpa [#allocation10], 1 }
 0x61b   :  { %1512 = vsyncpa [#allocation13], 1 }
 0x61c   :  { %1513 = vsyncpa [#allocation4], 1 }
 0x61d   :  { %1514 = vsyncpa [#allocation5], 1 }

</bundles_post_ra>
